<compile_context>
chip_gen: v7x
topology: tpu7x:2x2x1
jax: 0.10.0
libtpu: 0.0.40
codegen_flags: <defaults>
</compile_context>

<pallas_src>
from functools import partial

import jax
import jax.numpy as jnp
from jax.experimental import pallas as pl
from jax.experimental.pallas import tpu as pltpu

_LANE = 128
_SUBLANE = 8


def _round_up(x, m):
    return (x + m - 1) // m * m


# -----------------------------------------------------------------------------
# Fused forward kernel (one batch block per grid step)
# -----------------------------------------------------------------------------
def _fused_forward_kernel(ids_ref, conv_m_ref, conv_b_ref, mask_ref, *rest,
                          num_layers, seq_len, hidden_dim, v_pad):
    lstm_refs = rest[:2 * num_layers]
    fc_w_ref, fc_b_ref, out_ref = rest[2 * num_layers:]

    L = seq_len
    H = hidden_dim
    BL, k_max = ids_ref.shape                    # batch_block * L rows
    BB = BL // L
    Ft = conv_m_ref.shape[1]                     # lane-padded filter count

    # ---- embedding + both conv branches as ONE long-K one-hot matmul --------
    # conv_m row [i*v_pad + v] holds embedding[v] @ W_conv[window offset i]
    # (zero for offsets beyond a branch's own kernel size), so
    #   conv(b, t) = onehot(ids[b, t+0..t+k_max-1]) @ conv_m
    # is a single accumulating MXU matmul: no gather, no shifted slices.
    ids = ids_ref[...]                                             # (BL, k_max)
    viota = jax.lax.broadcasted_iota(jnp.int32, (BL, v_pad), 1)
    onehot = jnp.concatenate(
        [(viota == ids[:, i:i + 1]).astype(jnp.float32) for i in range(k_max)],
        axis=1)                                                    # (BL, k_max*v_pad)
    acc = jnp.dot(onehot, conv_m_ref[...], preferred_element_type=jnp.float32)
    y = jnp.maximum(acc + conv_b_ref[...], 0.0)                    # bias + ReLU
    # host-precomputed pool validity mask; zero is exact for a max over ReLU.
    y = y.reshape(BB, L, Ft) * mask_ref[...][None]
    h = jnp.max(y, axis=1)                                         # (BB, Ft)

    # ---- stacked bidirectional LSTM on a length-1 sequence ------------------
    # h0 = c0 = 0  =>  W_hh terms and the forget gate vanish; each layer is a
    # single gate matmul with columns [i_f, i_b, o_f, o_b, g_f, g_b, 0-pad]
    # lane-padded to 128.  sigmoid/tanh run on the whole 128-lane slab (EUP);
    # only the final elementwise products slice.  Output is [h_fwd | h_bwd].
    for layer in range(num_layers):
        w_ref, b_ref = lstm_refs[2 * layer], lstm_refs[2 * layer + 1]
        gates = jnp.dot(h.astype(jnp.bfloat16), w_ref[...],
                        preferred_element_type=jnp.float32) + b_ref[...]
        sig = jax.nn.sigmoid(gates)                                # full slab
        tnh = jnp.tanh(gates)                                      # full slab
        c = sig[:, :2 * H] * tnh[:, 4 * H:6 * H]                   # i * g (c0 = 0)
        h = sig[:, 2 * H:4 * H] * jnp.tanh(c)                      # o * tanh(c)

    # ---- final Linear; logits lane-padded to 128 -> unmasked full store -----
    out_ref[...] = jnp.dot(h.astype(jnp.bfloat16), fc_w_ref[...],
                           preferred_element_type=jnp.float32) + fc_b_ref[...]


# -----------------------------------------------------------------------------
# Host wrapper
# -----------------------------------------------------------------------------
def forward(params, x, *, kernel_sizes, num_filters, hidden_dim, num_classes,
            single_buffer_weights=True):
    """Runs the fused forward pass; returns (B, num_classes) f32 logits."""
    B, L = x.shape
    k_max = max(kernel_sizes)
    if L < k_max:
        raise ValueError(f"seq_len={L} must be >= max kernel size {k_max}")

    conv_m = params["conv_m"]
    v_pad = conv_m.shape[0] // k_max
    ft_pad = conv_m.shape[1]
    num_layers = len(params["lstm"])
    c_pad = params["fc_w"].shape[1]
    g_pad = params["lstm"][0][0].shape[1]

    # TODO(synk): for large vocabularies (v_pad >~ 2K) replace the one-hot
    # embedding fold with an in-kernel gather of the folded rows (scalar
    # prefetch + DMA from HBM); the one-hot matmul only makes sense while the
    # whole (k_max*V_pad, Ft_pad) table fits comfortably in VMEM.
    if v_pad > 2048:
        raise NotImplementedError("one-hot embedding fold only for small vocab")

    # batch block: always >= 2 grid steps so the ("parallel",) axis can shard
    # across v7x's two TensorCores and the ids/out DMAs can overlap compute.
    b_ceil = _round_up(B, _SUBLANE)
    block_b = min(_LANE, max(_SUBLANE, _round_up((b_ceil + 1) // 2, _SUBLANE)))
    b_pad = max(_round_up(B, block_b), 2 * block_b)
    ids2d = jnp.zeros((b_pad, L), jnp.int32).at[:B].set(x.astype(jnp.int32))

    # per-window-offset token ids (host-side shift; out-of-range positions are
    # filled with 0, which only ever hit zero conv_m columns or masked pool
    # positions, so they cannot affect the result).
    wins = [ids2d]
    for i in range(1, k_max):
        wins.append(jnp.concatenate(
            [ids2d[:, i:], jnp.zeros((b_pad, i), jnp.int32)], axis=1))
    ids_win = jnp.stack(wins, axis=-1).reshape(b_pad * L, k_max)

    # host-precomputed max-pool validity mask: branch j valid for t <= L - k_j
    t_idx = jnp.arange(L)
    pool_mask = jnp.zeros((L, ft_pad), jnp.float32)
    for j, kj in enumerate(kernel_sizes):
        valid = (t_idx <= L - kj).astype(jnp.float32)[:, None]
        pool_mask = pool_mask.at[:, j * num_filters:(j + 1) * num_filters].set(
            jnp.broadcast_to(valid, (L, num_filters)))

    weight_inputs = [conv_m, params["conv_b"], pool_mask]
    for w, b in params["lstm"]:
        weight_inputs += [w, b]
    weight_inputs += [params["fc_w"], params["fc_b"]]

    def _weight_spec(a):
        nd = a.ndim
        idx = lambda i: (0,) * nd
        if single_buffer_weights:
            # grid-invariant weight: one VMEM buffer instead of the default
            # double buffering (halves the weight VMEM footprint).
            return pl.BlockSpec(a.shape, idx, pipeline_mode=pl.Buffered(1))
        return pl.BlockSpec(a.shape, idx)

    def _nbytes(a):
        return a.size * a.dtype.itemsize

    # explicit VMEM budget: weights (single-buffered) + double-buffered
    # ids/out blocks + the in-kernel one-hot / conv slabs, with 2x headroom.
    weight_bytes = sum(_nbytes(a) for a in weight_inputs)
    io_bytes = 2 * (block_b * L * k_max * 4 + block_b * c_pad * 4)
    slab_bytes = block_b * L * (k_max * v_pad + 2 * ft_pad) * 4
    vmem_limit = int(min(64 * 2 ** 20,
                         max(32 * 2 ** 20,
                             2 * (weight_bytes + io_bytes + slab_bytes))))

    flops = (2 * b_pad * L * (k_max * v_pad) * ft_pad
             + sum(2 * b_pad * w.shape[0] * w.shape[1]
                   for w, _ in params["lstm"])
             + 2 * b_pad * params["fc_w"].shape[0] * c_pad)
    transcendentals = b_pad * num_layers * (2 * g_pad + 2 * hidden_dim)
    cost = pl.CostEstimate(
        flops=int(flops), transcendentals=int(transcendentals),
        bytes_accessed=int(_nbytes(ids_win) + weight_bytes + b_pad * c_pad * 4))

    kernel = partial(_fused_forward_kernel, num_layers=num_layers, seq_len=L,
                     hidden_dim=hidden_dim, v_pad=v_pad)

    out = pl.pallas_call(
        kernel,
        out_shape=jax.ShapeDtypeStruct((b_pad, c_pad), jnp.float32),
        grid=(b_pad // block_b,),
        in_specs=[pl.BlockSpec((block_b * L, k_max), lambda i: (i, 0))]
                 + [_weight_spec(a) for a in weight_inputs],
        out_specs=pl.BlockSpec((block_b, c_pad), lambda i: (i, 0)),
        compiler_params=pltpu.CompilerParams(
            dimension_semantics=("parallel",),
            vmem_limit_bytes=vmem_limit),
        cost_estimate=cost,
    )(ids_win, *weight_inputs)

    return out[:B, :num_classes]


# -----------------------------------------------------------------------------
# Parameters: raw (PyTorch layout) + packed (kernel layout)
# -----------------------------------------------------------------------------
def init_params(key, vocab_size, embed_dim, num_classes, hidden_dim,
                num_layers, kernel_sizes, num_filters):
    """bf16-rounds the weights the kernel consumes in bf16; the packed kernel
    weights and the pure-JAX reference share the same rounded values."""
    def bf16_round(a):
        return a.astype(jnp.bfloat16).astype(jnp.float32)

    keys = iter(jax.random.split(key, 64))

    def nrm(shape):
        return jax.random.normal(next(keys), shape, jnp.float32) * 0.1

    H = hidden_dim
    raw = {}
    table = bf16_round(nrm((vocab_size, embed_dim)))           # nn.Embedding
    raw["embedding"] = table

    raw["convs"] = []                                          # nn.Conv2d(1,F,(k,E))
    for k in kernel_sizes:
        raw["convs"].append((bf16_round(nrm((num_filters, k, embed_dim))),
                             nrm((num_filters,))))

    feat = num_filters * len(kernel_sizes)
    raw["lstm"] = []                                           # bidirectional LSTM
    in_size = feat
    for _ in range(num_layers):
        layer = {}
        for d in ("fwd", "bwd"):
            layer[d] = {
                "w_ih": bf16_round(nrm((4 * H, in_size))),
                "b_ih": nrm((4 * H,)),
                "b_hh": nrm((4 * H,)),
                # w_hh omitted: it multiplies h0 == 0 on the length-1 sequence
                # this module feeds the LSTM, so it can never affect the output.
            }
        raw["lstm"].append(layer)
        in_size = 2 * H

    raw["fc"] = (bf16_round(nrm((num_classes, 2 * H))), nrm((num_classes,)))

    # ---------------- pack for the fused kernel ----------------
    packed = {}

    # fold the embedding table into the conv weights and merge all window
    # offsets / kernel-size branches into one (k_max*V_pad, Ft_pad) slab
    # (inference-only algebra: emb @ Wc_i == onehot @ (table @ Wc_i); the
    # embedding feeds only the convs).  Kept in f32 so the fold adds no extra
    # rounding vs. the reference.
    k_max = max(kernel_sizes)
    v_pad = _round_up(vocab_size, _LANE)
    ft_pad = _round_up(feat, _LANE)
    conv_m = jnp.zeros((k_max * v_pad, ft_pad), jnp.float32)
    conv_b = jnp.zeros((1, ft_pad), jnp.float32)
    for j, ((wk, bk), k) in enumerate(zip(raw["convs"], kernel_sizes)):
        for i in range(k):
            m_i = table @ wk[:, i, :].T                        # (V, F)
            conv_m = conv_m.at[i * v_pad:i * v_pad + vocab_size,
                               j * num_filters:(j + 1) * num_filters].set(m_i)
        conv_b = conv_b.at[0, j * num_filters:(j + 1) * num_filters].set(bk)
    packed["conv_m"] = conv_m
    packed["conv_b"] = conv_b

    # LSTM gate matmul per layer: columns [i_f, i_b, o_f, o_b, g_f, g_b, 0-pad]
    # lane-padded to 128; torch per-direction gate order is [i, f, g, o]; the
    # forget gate is dropped (c0 == 0).  Layer-0 rows are padded to Ft_pad.
    g_pad = _round_up(6 * H, _LANE)
    packed["lstm"] = []
    in_dim, in_rows = feat, ft_pad
    for layer in raw["lstm"]:
        w = jnp.zeros((in_rows, g_pad), jnp.float32)
        b = jnp.zeros((1, g_pad), jnp.float32)
        col = 0
        for gate in (0, 3, 2):                                 # i, o, g
            for d in ("fwd", "bwd"):
                w_ih = layer[d]["w_ih"]
                bias = layer[d]["b_ih"] + layer[d]["b_hh"]
                w = w.at[:in_dim, col:col + H].set(w_ih[gate * H:(gate + 1) * H].T)
                b = b.at[0, col:col + H].set(bias[gate * H:(gate + 1) * H])
                col += H
        packed["lstm"].append((w.astype(jnp.bfloat16), b))
        in_dim = in_rows = 2 * H

    # final Linear, lane-padded to 128 output columns for an unmasked store
    w_fc, b_fc = raw["fc"]
    c_pad = _round_up(num_classes, _LANE)
    packed["fc_w"] = (jnp.zeros((2 * H, c_pad), jnp.float32)
                      .at[:, :num_classes].set(w_fc.T).astype(jnp.bfloat16))
    packed["fc_b"] = (jnp.zeros((1, c_pad), jnp.float32)
                      .at[0, :num_classes].set(b_fc))
    return packed, raw


# -----------------------------------------------------------------------------
# Pure-JAX reference (mirrors the PyTorch module, eval mode)
# -----------------------------------------------------------------------------
def reference_forward(raw, x, *, kernel_sizes):
    emb = jnp.take(raw["embedding"], x, axis=0)                # (B, L, E)
    L = emb.shape[1]

    pools = []
    for (wk, bk), k in zip(raw["convs"], kernel_sizes):
        outs = [jnp.einsum("bke,fke->bf", emb[:, t:t + k, :], wk) + bk
                for t in range(L - k + 1)]
        conv = jax.nn.relu(jnp.stack(outs, axis=-1))           # (B, F, L_out)
        pools.append(jnp.max(conv, axis=-1))
    h = jnp.concatenate(pools, axis=1)                         # (B, F_total)

    def cell(x_in, p):                                         # h0 = c0 = 0
        gates = x_in @ p["w_ih"].T + p["b_ih"] + p["b_hh"]
        i, _f, g, o = jnp.split(gates, 4, axis=1)
        c = jax.nn.sigmoid(i) * jnp.tanh(g)
        return jax.nn.sigmoid(o) * jnp.tanh(c)

    for layer in raw["lstm"]:
        h = jnp.concatenate([cell(h, layer["fwd"]), cell(h, layer["bwd"])],
                            axis=1)                            # [h_fwd | h_bwd]

    w_fc, b_fc = raw["fc"]
    return h @ w_fc.T + b_fc                                   # dropout = identity


if __name__ == "__main__":
    vocab_size, embed_dim, num_classes = 50, 16, 4
    hidden_dim, num_layers = 16, 2
    kernel_sizes, num_filters = (2, 3), 8
    B, L = 2, 8

    key = jax.random.PRNGKey(0)
    pkey, xkey = jax.random.split(key)
    packed, raw = init_params(pkey, vocab_size, embed_dim, num_classes,
                              hidden_dim, num_layers, kernel_sizes, num_filters)
    x = jax.random.randint(xkey, (B, L), 0, vocab_size, dtype=jnp.int32)

    base = partial(forward, kernel_sizes=kernel_sizes, num_filters=num_filters,
                   hidden_dim=hidden_dim, num_classes=num_classes)
    try:
        out = jax.jit(partial(base, single_buffer_weights=True))(packed, x)
        jax.block_until_ready(out)
    except Exception:
        # fallback for jax builds without BlockSpec pipeline_mode support
        out = jax.jit(partial(base, single_buffer_weights=False))(packed, x)
        jax.block_until_ready(out)
    assert out.shape == (B, num_classes) and out.dtype == jnp.float32

    # correctness check against the pure-JAX reference built from the raw
    # PyTorch-layout weights (same bf16-rounded values, f32 math)
    ref = reference_forward(raw, x, kernel_sizes=kernel_sizes)
    max_err = float(jnp.max(jnp.abs(out - ref)))
    assert max_err < 2e-2, f"kernel/reference mismatch: max abs err {max_err}"
    print("KERNEL_OK")
</pallas_src>

<mosaic_0001>
module attributes {stable_mosaic.version = 11 : i64} {
  func.func @_fused_forward_kernel(%arg0: i32, %arg1: memref<64x3xi32, #tpu.memory_space<vmem>>, %arg2: memref<384x128xf32, #tpu.memory_space<vmem>>, %arg3: memref<1x128xf32, #tpu.memory_space<vmem>>, %arg4: memref<8x128xf32, #tpu.memory_space<vmem>>, %arg5: memref<128x128xbf16, #tpu.memory_space<vmem>>, %arg6: memref<1x128xf32, #tpu.memory_space<vmem>>, %arg7: memref<32x128xbf16, #tpu.memory_space<vmem>>, %arg8: memref<1x128xf32, #tpu.memory_space<vmem>>, %arg9: memref<32x128xbf16, #tpu.memory_space<vmem>>, %arg10: memref<1x128xf32, #tpu.memory_space<vmem>>, %arg11: memref<8x128xf32, #tpu.memory_space<vmem>>) attributes {dimension_semantics = [#tpu.dimension_semantics<parallel>], iteration_bounds = array<i64: 2>, scalar_prefetch = 0 : i64, scratch_operands = 0 : i64, tpu.core_type = #tpu.core_type<tc>, window_params = [{transform_indices = @transform_0, window_bounds = array<i64: 64, 3>}, {pipeline_mode = #tpu.pipeline_mode<synchronous>, transform_indices = @transform_1, window_bounds = array<i64: 384, 128>}, {pipeline_mode = #tpu.pipeline_mode<synchronous>, transform_indices = @transform_2, window_bounds = array<i64: 1, 128>}, {pipeline_mode = #tpu.pipeline_mode<synchronous>, transform_indices = @transform_3, window_bounds = array<i64: 8, 128>}, {pipeline_mode = #tpu.pipeline_mode<synchronous>, transform_indices = @transform_4, window_bounds = array<i64: 128, 128>}, {pipeline_mode = #tpu.pipeline_mode<synchronous>, transform_indices = @transform_5, window_bounds = array<i64: 1, 128>}, {pipeline_mode = #tpu.pipeline_mode<synchronous>, transform_indices = @transform_6, window_bounds = array<i64: 32, 128>}, {pipeline_mode = #tpu.pipeline_mode<synchronous>, transform_indices = @transform_7, window_bounds = array<i64: 1, 128>}, {pipeline_mode = #tpu.pipeline_mode<synchronous>, transform_indices = @transform_8, window_bounds = array<i64: 32, 128>}, {pipeline_mode = #tpu.pipeline_mode<synchronous>, transform_indices = @transform_9, window_bounds = array<i64: 1, 128>}, {transform_indices = @transform_10, window_bounds = array<i64: 8, 128>}]} {
    %c0 = arith.constant 0 : index
    %c0_0 = arith.constant 0 : index
    %0 = vector.load %arg1[%c0, %c0_0] : memref<64x3xi32, #tpu.memory_space<vmem>>, vector<64x3xi32>
    %1 = tpu.iota {dimensions = array<i32: 1>} : vector<64x128xi32>
    %2 = vector.extract_strided_slice %0 {offsets = [0, 0], sizes = [64, 1], strides = [1, 1]} : vector<64x3xi32> to vector<64x1xi32>
    %3 = vector.broadcast %2 : vector<64x1xi32> to vector<64x128xi32>
    %4 = arith.cmpi eq, %1, %3 : vector<64x128xi32>
    %5 = arith.extui %4 : vector<64x128xi1> to vector<64x128xi32>
    %6 = arith.sitofp %5 : vector<64x128xi32> to vector<64x128xf32>
    %7 = vector.extract_strided_slice %0 {offsets = [0, 1], sizes = [64, 1], strides = [1, 1]} : vector<64x3xi32> to vector<64x1xi32>
    %8 = vector.broadcast %7 : vector<64x1xi32> to vector<64x128xi32>
    %9 = arith.cmpi eq, %1, %8 : vector<64x128xi32>
    %10 = arith.extui %9 : vector<64x128xi1> to vector<64x128xi32>
    %11 = arith.sitofp %10 : vector<64x128xi32> to vector<64x128xf32>
    %12 = vector.extract_strided_slice %0 {offsets = [0, 2], sizes = [64, 1], strides = [1, 1]} : vector<64x3xi32> to vector<64x1xi32>
    %13 = vector.broadcast %12 : vector<64x1xi32> to vector<64x128xi32>
    %14 = arith.cmpi eq, %1, %13 : vector<64x128xi32>
    %15 = arith.extui %14 : vector<64x128xi1> to vector<64x128xi32>
    %16 = arith.sitofp %15 : vector<64x128xi32> to vector<64x128xf32>
    %17 = tpu.concatenate %6, %11, %16 in 1 : vector<64x128xf32>, vector<64x128xf32>, vector<64x128xf32> -> vector<64x384xf32>
    %c0_1 = arith.constant 0 : index
    %c0_2 = arith.constant 0 : index
    %18 = vector.load %arg2[%c0_1, %c0_2] : memref<384x128xf32, #tpu.memory_space<vmem>>, vector<384x128xf32>
    %cst = arith.constant dense<0.000000e+00> : vector<64x128xf32>
    %19 = tpu.matmul %17, %18, %cst {dimension_numbers = #tpu.dot_dimension_numbers<[1], [0], [0], [1], [0, 0, 1, 1], [], []>} : vector<64x384xf32>, vector<384x128xf32>, vector<64x128xf32> -> vector<64x128xf32>
    %c0_3 = arith.constant 0 : index
    %c0_4 = arith.constant 0 : index
    %20 = vector.load %arg3[%c0_3, %c0_4] : memref<1x128xf32, #tpu.memory_space<vmem>>, vector<1x128xf32>
    %21 = vector.broadcast %20 : vector<1x128xf32> to vector<64x128xf32>
    %22 = arith.addf %19, %21 : vector<64x128xf32>
    %cst_5 = arith.constant 0.000000e+00 : f32
    %23 = vector.broadcast %cst_5 : f32 to vector<64x128xf32>
    %24 = arith.maximumf %22, %23 : vector<64x128xf32>
    %25 = vector.shape_cast %24 : vector<64x128xf32> to vector<8x8x128xf32>
    %c0_6 = arith.constant 0 : index
    %c0_7 = arith.constant 0 : index
    %26 = vector.load %arg4[%c0_6, %c0_7] : memref<8x128xf32, #tpu.memory_space<vmem>>, vector<8x128xf32>
    %27 = vector.shape_cast %26 : vector<8x128xf32> to vector<1x8x128xf32>
    %28 = vector.broadcast %27 : vector<1x8x128xf32> to vector<8x8x128xf32>
    %29 = arith.mulf %25, %28 : vector<8x8x128xf32>
    %cst_8 = arith.constant dense<0xFF800000> : vector<8x128xf32>
    %30 = vector.multi_reduction <maximumf>, %29, %cst_8 [1] : vector<8x8x128xf32> to vector<8x128xf32>
    %31 = arith.truncf %30 : vector<8x128xf32> to vector<8x128xbf16>
    %c0_9 = arith.constant 0 : index
    %c0_10 = arith.constant 0 : index
    %32 = vector.load %arg5[%c0_9, %c0_10] : memref<128x128xbf16, #tpu.memory_space<vmem>>, vector<128x128xbf16>
    %cst_11 = arith.constant dense<0.000000e+00> : vector<8x128xf32>
    %33 = tpu.matmul %31, %32, %cst_11 {dimension_numbers = #tpu.dot_dimension_numbers<[1], [0], [0], [1], [0, 0, 1, 1], [], []>} : vector<8x128xbf16>, vector<128x128xbf16>, vector<8x128xf32> -> vector<8x128xf32>
    %c0_12 = arith.constant 0 : index
    %c0_13 = arith.constant 0 : index
    %34 = vector.load %arg6[%c0_12, %c0_13] : memref<1x128xf32, #tpu.memory_space<vmem>>, vector<1x128xf32>
    %35 = vector.broadcast %34 : vector<1x128xf32> to vector<8x128xf32>
    %36 = arith.addf %33, %35 : vector<8x128xf32>
    %37 = arith.negf %36 : vector<8x128xf32>
    %38 = math.exp %37 : vector<8x128xf32>
    %cst_14 = arith.constant 1.000000e+00 : f32
    %39 = vector.broadcast %cst_14 : f32 to vector<8x128xf32>
    %40 = arith.addf %39, %38 : vector<8x128xf32>
    %41 = arith.divf %39, %40 : vector<8x128xf32>
    %42 = math.tanh %36 : vector<8x128xf32>
    %43 = vector.extract_strided_slice %41 {offsets = [0, 0], sizes = [8, 32], strides = [1, 1]} : vector<8x128xf32> to vector<8x32xf32>
    %44 = vector.extract_strided_slice %42 {offsets = [0, 64], sizes = [8, 32], strides = [1, 1]} : vector<8x128xf32> to vector<8x32xf32>
    %45 = arith.mulf %43, %44 : vector<8x32xf32>
    %46 = vector.extract_strided_slice %41 {offsets = [0, 32], sizes = [8, 32], strides = [1, 1]} : vector<8x128xf32> to vector<8x32xf32>
    %47 = math.tanh %45 : vector<8x32xf32>
    %48 = arith.mulf %46, %47 : vector<8x32xf32>
    %49 = arith.truncf %48 : vector<8x32xf32> to vector<8x32xbf16>
    %c0_15 = arith.constant 0 : index
    %c0_16 = arith.constant 0 : index
    %50 = vector.load %arg7[%c0_15, %c0_16] : memref<32x128xbf16, #tpu.memory_space<vmem>>, vector<32x128xbf16>
    %cst_17 = arith.constant dense<0.000000e+00> : vector<8x128xf32>
    %51 = tpu.matmul %49, %50, %cst_17 {dimension_numbers = #tpu.dot_dimension_numbers<[1], [0], [0], [1], [0, 0, 1, 1], [], []>} : vector<8x32xbf16>, vector<32x128xbf16>, vector<8x128xf32> -> vector<8x128xf32>
    %c0_18 = arith.constant 0 : index
    %c0_19 = arith.constant 0 : index
    %52 = vector.load %arg8[%c0_18, %c0_19] : memref<1x128xf32, #tpu.memory_space<vmem>>, vector<1x128xf32>
    %53 = vector.broadcast %52 : vector<1x128xf32> to vector<8x128xf32>
    %54 = arith.addf %51, %53 : vector<8x128xf32>
    %55 = arith.negf %54 : vector<8x128xf32>
    %56 = math.exp %55 : vector<8x128xf32>
    %cst_20 = arith.constant 1.000000e+00 : f32
    %57 = vector.broadcast %cst_20 : f32 to vector<8x128xf32>
    %58 = arith.addf %57, %56 : vector<8x128xf32>
    %59 = arith.divf %57, %58 : vector<8x128xf32>
    %60 = math.tanh %54 : vector<8x128xf32>
    %61 = vector.extract_strided_slice %59 {offsets = [0, 0], sizes = [8, 32], strides = [1, 1]} : vector<8x128xf32> to vector<8x32xf32>
    %62 = vector.extract_strided_slice %60 {offsets = [0, 64], sizes = [8, 32], strides = [1, 1]} : vector<8x128xf32> to vector<8x32xf32>
    %63 = arith.mulf %61, %62 : vector<8x32xf32>
    %64 = vector.extract_strided_slice %59 {offsets = [0, 32], sizes = [8, 32], strides = [1, 1]} : vector<8x128xf32> to vector<8x32xf32>
    %65 = math.tanh %63 : vector<8x32xf32>
    %66 = arith.mulf %64, %65 : vector<8x32xf32>
    %67 = arith.truncf %66 : vector<8x32xf32> to vector<8x32xbf16>
    %c0_21 = arith.constant 0 : index
    %c0_22 = arith.constant 0 : index
    %68 = vector.load %arg9[%c0_21, %c0_22] : memref<32x128xbf16, #tpu.memory_space<vmem>>, vector<32x128xbf16>
    %cst_23 = arith.constant dense<0.000000e+00> : vector<8x128xf32>
    %69 = tpu.matmul %67, %68, %cst_23 {dimension_numbers = #tpu.dot_dimension_numbers<[1], [0], [0], [1], [0, 0, 1, 1], [], []>} : vector<8x32xbf16>, vector<32x128xbf16>, vector<8x128xf32> -> vector<8x128xf32>
    %c0_24 = arith.constant 0 : index
    %c0_25 = arith.constant 0 : index
    %70 = vector.load %arg10[%c0_24, %c0_25] : memref<1x128xf32, #tpu.memory_space<vmem>>, vector<1x128xf32>
    %71 = vector.broadcast %70 : vector<1x128xf32> to vector<8x128xf32>
    %72 = arith.addf %69, %71 : vector<8x128xf32>
    %c0_26 = arith.constant 0 : index
    %c0_27 = arith.constant 0 : index
    %73 = vector.load %arg11[%c0_26, %c0_27] : memref<8x128xf32, #tpu.memory_space<vmem>>, vector<8x128xf32>
    tpu.vector_store %arg11[%c0_26, %c0_27], %72 {strides = array<i32>} : memref<8x128xf32, #tpu.memory_space<vmem>>, vector<8x128xf32>,
    return
  }
  func.func @transform_0(%arg0: i32) -> (i32, i32) {
    %c0_i32 = arith.constant 0 : i32
    %c0_i32_0 = arith.constant 0 : i32
    return %arg0, %c0_i32 : i32, i32
  }
  func.func @transform_1(%arg0: i32) -> (i32, i32) {
    %c0_i32 = arith.constant 0 : i32
    %c0_i32_0 = arith.constant 0 : i32
    %c0_i32_1 = arith.constant 0 : i32
    return %c0_i32, %c0_i32_0 : i32, i32
  }
  func.func @transform_2(%arg0: i32) -> (i32, i32) {
    %c0_i32 = arith.constant 0 : i32
    %c0_i32_0 = arith.constant 0 : i32
    %c0_i32_1 = arith.constant 0 : i32
    return %c0_i32, %c0_i32_0 : i32, i32
  }
  func.func @transform_3(%arg0: i32) -> (i32, i32) {
    %c0_i32 = arith.constant 0 : i32
    %c0_i32_0 = arith.constant 0 : i32
    %c0_i32_1 = arith.constant 0 : i32
    return %c0_i32, %c0_i32_0 : i32, i32
  }
  func.func @transform_4(%arg0: i32) -> (i32, i32) {
    %c0_i32 = arith.constant 0 : i32
    %c0_i32_0 = arith.constant 0 : i32
    %c0_i32_1 = arith.constant 0 : i32
    return %c0_i32, %c0_i32_0 : i32, i32
  }
  func.func @transform_5(%arg0: i32) -> (i32, i32) {
    %c0_i32 = arith.constant 0 : i32
    %c0_i32_0 = arith.constant 0 : i32
    %c0_i32_1 = arith.constant 0 : i32
    return %c0_i32, %c0_i32_0 : i32, i32
  }
  func.func @transform_6(%arg0: i32) -> (i32, i32) {
    %c0_i32 = arith.constant 0 : i32
    %c0_i32_0 = arith.constant 0 : i32
    %c0_i32_1 = arith.constant 0 : i32
    return %c0_i32, %c0_i32_0 : i32, i32
  }
  func.func @transform_7(%arg0: i32) -> (i32, i32) {
    %c0_i32 = arith.constant 0 : i32
    %c0_i32_0 = arith.constant 0 : i32
    %c0_i32_1 = arith.constant 0 : i32
    return %c0_i32, %c0_i32_0 : i32, i32
  }
  func.func @transform_8(%arg0: i32) -> (i32, i32) {
    %c0_i32 = arith.constant 0 : i32
    %c0_i32_0 = arith.constant 0 : i32
    %c0_i32_1 = arith.constant 0 : i32
    return %c0_i32, %c0_i32_0 : i32, i32
  }
  func.func @transform_9(%arg0: i32) -> (i32, i32) {
    %c0_i32 = arith.constant 0 : i32
    %c0_i32_0 = arith.constant 0 : i32
    %c0_i32_1 = arith.constant 0 : i32
    return %c0_i32, %c0_i32_0 : i32, i32
  }
  func.func @transform_10(%arg0: i32) -> (i32, i32) {
    %c0_i32 = arith.constant 0 : i32
    %c0_i32_0 = arith.constant 0 : i32
    return %arg0, %c0_i32 : i32, i32
  }
}

module attributes {stable_mosaic.version = 11 : i64} {
  func.func @_fused_forward_kernel(%arg0: i32, %arg1: memref<64x3xi32, #tpu.memory_space<vmem>>, %arg2: memref<384x128xf32, #tpu.memory_space<vmem>>, %arg3: memref<1x128xf32, #tpu.memory_space<vmem>>, %arg4: memref<8x128xf32, #tpu.memory_space<vmem>>, %arg5: memref<128x128xbf16, #tpu.memory_space<vmem>>, %arg6: memref<1x128xf32, #tpu.memory_space<vmem>>, %arg7: memref<32x128xbf16, #tpu.memory_space<vmem>>, %arg8: memref<1x128xf32, #tpu.memory_space<vmem>>, %arg9: memref<32x128xbf16, #tpu.memory_space<vmem>>, %arg10: memref<1x128xf32, #tpu.memory_space<vmem>>, %arg11: memref<8x128xf32, #tpu.memory_space<vmem>>) attributes {dimension_semantics = [#tpu.dimension_semantics<parallel>], iteration_bounds = array<i64: 2>, scalar_prefetch = 0 : i64, scratch_operands = 0 : i64, tpu.core_type = #tpu.core_type<tc>, window_params = [{transform_indices = @transform_0, window_bounds = array<i64: 64, 3>}, {pipeline_mode = #tpu.pipeline_mode<synchronous>, transform_indices = @transform_1, window_bounds = array<i64: 384, 128>}, {pipeline_mode = #tpu.pipeline_mode<synchronous>, transform_indices = @transform_2, window_bounds = array<i64: 1, 128>}, {pipeline_mode = #tpu.pipeline_mode<synchronous>, transform_indices = @transform_3, window_bounds = array<i64: 8, 128>}, {pipeline_mode = #tpu.pipeline_mode<synchronous>, transform_indices = @transform_4, window_bounds = array<i64: 128, 128>}, {pipeline_mode = #tpu.pipeline_mode<synchronous>, transform_indices = @transform_5, window_bounds = array<i64: 1, 128>}, {pipeline_mode = #tpu.pipeline_mode<synchronous>, transform_indices = @transform_6, window_bounds = array<i64: 32, 128>}, {pipeline_mode = #tpu.pipeline_mode<synchronous>, transform_indices = @transform_7, window_bounds = array<i64: 1, 128>}, {pipeline_mode = #tpu.pipeline_mode<synchronous>, transform_indices = @transform_8, window_bounds = array<i64: 32, 128>}, {pipeline_mode = #tpu.pipeline_mode<synchronous>, transform_indices = @transform_9, window_bounds = array<i64: 1, 128>}, {transform_indices = @transform_10, window_bounds = array<i64: 8, 128>}]} {
    %c0 = arith.constant 0 : index
    %c0_0 = arith.constant 0 : index
    %0 = vector.load %arg1[%c0, %c0_0] : memref<64x3xi32, #tpu.memory_space<vmem>>, vector<64x3xi32>
    %1 = tpu.iota {dimensions = array<i32: 1>} : vector<64x128xi32>
    %2 = vector.extract_strided_slice %0 {offsets = [0, 0], sizes = [64, 1], strides = [1, 1]} : vector<64x3xi32> to vector<64x1xi32>
    %3 = vector.broadcast %2 : vector<64x1xi32> to vector<64x128xi32>
    %4 = arith.cmpi eq, %1, %3 : vector<64x128xi32>
    %5 = arith.extui %4 : vector<64x128xi1> to vector<64x128xi32>
    %6 = arith.sitofp %5 : vector<64x128xi32> to vector<64x128xf32>
    %7 = vector.extract_strided_slice %0 {offsets = [0, 1], sizes = [64, 1], strides = [1, 1]} : vector<64x3xi32> to vector<64x1xi32>
    %8 = vector.broadcast %7 : vector<64x1xi32> to vector<64x128xi32>
    %9 = arith.cmpi eq, %1, %8 : vector<64x128xi32>
    %10 = arith.extui %9 : vector<64x128xi1> to vector<64x128xi32>
    %11 = arith.sitofp %10 : vector<64x128xi32> to vector<64x128xf32>
    %12 = vector.extract_strided_slice %0 {offsets = [0, 2], sizes = [64, 1], strides = [1, 1]} : vector<64x3xi32> to vector<64x1xi32>
    %13 = vector.broadcast %12 : vector<64x1xi32> to vector<64x128xi32>
    %14 = arith.cmpi eq, %1, %13 : vector<64x128xi32>
    %15 = arith.extui %14 : vector<64x128xi1> to vector<64x128xi32>
    %16 = arith.sitofp %15 : vector<64x128xi32> to vector<64x128xf32>
    %17 = tpu.concatenate %6, %11, %16 in 1 : vector<64x128xf32>, vector<64x128xf32>, vector<64x128xf32> -> vector<64x384xf32>
    %c0_1 = arith.constant 0 : index
    %c0_2 = arith.constant 0 : index
    %18 = vector.load %arg2[%c0_1, %c0_2] : memref<384x128xf32, #tpu.memory_space<vmem>>, vector<384x128xf32>
    %cst = arith.constant dense<0.000000e+00> : vector<64x128xf32>
    %19 = tpu.matmul %17, %18, %cst {dimension_numbers = #tpu.dot_dimension_numbers<[1], [0], [0], [1], [0, 0, 1, 1], [], []>} : vector<64x384xf32>, vector<384x128xf32>, vector<64x128xf32> -> vector<64x128xf32>
    %c0_3 = arith.constant 0 : index
    %c0_4 = arith.constant 0 : index
    %20 = vector.load %arg3[%c0_3, %c0_4] : memref<1x128xf32, #tpu.memory_space<vmem>>, vector<1x128xf32>
    %21 = vector.broadcast %20 : vector<1x128xf32> to vector<64x128xf32>
    %22 = arith.addf %19, %21 : vector<64x128xf32>
    %cst_5 = arith.constant 0.000000e+00 : f32
    %23 = vector.broadcast %cst_5 : f32 to vector<64x128xf32>
    %24 = arith.maximumf %22, %23 : vector<64x128xf32>
    %25 = vector.shape_cast %24 : vector<64x128xf32> to vector<8x8x128xf32>
    %c0_6 = arith.constant 0 : index
    %c0_7 = arith.constant 0 : index
    %26 = vector.load %arg4[%c0_6, %c0_7] : memref<8x128xf32, #tpu.memory_space<vmem>>, vector<8x128xf32>
    %27 = vector.shape_cast %26 : vector<8x128xf32> to vector<1x8x128xf32>
    %28 = vector.broadcast %27 : vector<1x8x128xf32> to vector<8x8x128xf32>
    %29 = arith.mulf %25, %28 : vector<8x8x128xf32>
    %cst_8 = arith.constant dense<0xFF800000> : vector<8x128xf32>
    %30 = vector.multi_reduction <maximumf>, %29, %cst_8 [1] : vector<8x8x128xf32> to vector<8x128xf32>
    %31 = arith.truncf %30 : vector<8x128xf32> to vector<8x128xbf16>
    %c0_9 = arith.constant 0 : index
    %c0_10 = arith.constant 0 : index
    %32 = vector.load %arg5[%c0_9, %c0_10] : memref<128x128xbf16, #tpu.memory_space<vmem>>, vector<128x128xbf16>
    %cst_11 = arith.constant dense<0.000000e+00> : vector<8x128xf32>
    %33 = tpu.matmul %31, %32, %cst_11 {dimension_numbers = #tpu.dot_dimension_numbers<[1], [0], [0], [1], [0, 0, 1, 1], [], []>} : vector<8x128xbf16>, vector<128x128xbf16>, vector<8x128xf32> -> vector<8x128xf32>
    %c0_12 = arith.constant 0 : index
    %c0_13 = arith.constant 0 : index
    %34 = vector.load %arg6[%c0_12, %c0_13] : memref<1x128xf32, #tpu.memory_space<vmem>>, vector<1x128xf32>
    %35 = vector.broadcast %34 : vector<1x128xf32> to vector<8x128xf32>
    %36 = arith.addf %33, %35 : vector<8x128xf32>
    %37 = arith.negf %36 : vector<8x128xf32>
    %38 = math.exp %37 : vector<8x128xf32>
    %cst_14 = arith.constant 1.000000e+00 : f32
    %39 = vector.broadcast %cst_14 : f32 to vector<8x128xf32>
    %40 = arith.addf %39, %38 : vector<8x128xf32>
    %41 = arith.divf %39, %40 : vector<8x128xf32>
    %42 = math.tanh %36 : vector<8x128xf32>
    %43 = vector.extract_strided_slice %41 {offsets = [0, 0], sizes = [8, 32], strides = [1, 1]} : vector<8x128xf32> to vector<8x32xf32>
    %44 = vector.extract_strided_slice %42 {offsets = [0, 64], sizes = [8, 32], strides = [1, 1]} : vector<8x128xf32> to vector<8x32xf32>
    %45 = arith.mulf %43, %44 : vector<8x32xf32>
    %46 = vector.extract_strided_slice %41 {offsets = [0, 32], sizes = [8, 32], strides = [1, 1]} : vector<8x128xf32> to vector<8x32xf32>
    %47 = math.tanh %45 : vector<8x32xf32>
    %48 = arith.mulf %46, %47 : vector<8x32xf32>
    %49 = arith.truncf %48 : vector<8x32xf32> to vector<8x32xbf16>
    %c0_15 = arith.constant 0 : index
    %c0_16 = arith.constant 0 : index
    %50 = vector.load %arg7[%c0_15, %c0_16] : memref<32x128xbf16, #tpu.memory_space<vmem>>, vector<32x128xbf16>
    %cst_17 = arith.constant dense<0.000000e+00> : vector<8x128xf32>
    %51 = tpu.matmul %49, %50, %cst_17 {dimension_numbers = #tpu.dot_dimension_numbers<[1], [0], [0], [1], [0, 0, 1, 1], [], []>} : vector<8x32xbf16>, vector<32x128xbf16>, vector<8x128xf32> -> vector<8x128xf32>
    %c0_18 = arith.constant 0 : index
    %c0_19 = arith.constant 0 : index
    %52 = vector.load %arg8[%c0_18, %c0_19] : memref<1x128xf32, #tpu.memory_space<vmem>>, vector<1x128xf32>
    %53 = vector.broadcast %52 : vector<1x128xf32> to vector<8x128xf32>
    %54 = arith.addf %51, %53 : vector<8x128xf32>
    %55 = arith.negf %54 : vector<8x128xf32>
    %56 = math.exp %55 : vector<8x128xf32>
    %cst_20 = arith.constant 1.000000e+00 : f32
    %57 = vector.broadcast %cst_20 : f32 to vector<8x128xf32>
    %58 = arith.addf %57, %56 : vector<8x128xf32>
    %59 = arith.divf %57, %58 : vector<8x128xf32>
    %60 = math.tanh %54 : vector<8x128xf32>
    %61 = vector.extract_strided_slice %59 {offsets = [0, 0], sizes = [8, 32], strides = [1, 1]} : vector<8x128xf32> to vector<8x32xf32>
    %62 = vector.extract_strided_slice %60 {offsets = [0, 64], sizes = [8, 32], strides = [1, 1]} : vector<8x128xf32> to vector<8x32xf32>
    %63 = arith.mulf %61, %62 : vector<8x32xf32>
    %64 = vector.extract_strided_slice %59 {offsets = [0, 32], sizes = [8, 32], strides = [1, 1]} : vector<8x128xf32> to vector<8x32xf32>
    %65 = math.tanh %63 : vector<8x32xf32>
    %66 = arith.mulf %64, %65 : vector<8x32xf32>
    %67 = arith.truncf %66 : vector<8x32xf32> to vector<8x32xbf16>
    %c0_21 = arith.constant 0 : index
    %c0_22 = arith.constant 0 : index
    %68 = vector.load %arg9[%c0_21, %c0_22] : memref<32x128xbf16, #tpu.memory_space<vmem>>, vector<32x128xbf16>
    %cst_23 = arith.constant dense<0.000000e+00> : vector<8x128xf32>
    %69 = tpu.matmul %67, %68, %cst_23 {dimension_numbers = #tpu.dot_dimension_numbers<[1], [0], [0], [1], [0, 0, 1, 1], [], []>} : vector<8x32xbf16>, vector<32x128xbf16>, vector<8x128xf32> -> vector<8x128xf32>
    %c0_24 = arith.constant 0 : index
    %c0_25 = arith.constant 0 : index
    %70 = vector.load %arg10[%c0_24, %c0_25] : memref<1x128xf32, #tpu.memory_space<vmem>>, vector<1x128xf32>
    %71 = vector.broadcast %70 : vector<1x128xf32> to vector<8x128xf32>
    %72 = arith.addf %69, %71 : vector<8x128xf32>
    %c0_26 = arith.constant 0 : index
    %c0_27 = arith.constant 0 : index
    %73 = vector.load %arg11[%c0_26, %c0_27] : memref<8x128xf32, #tpu.memory_space<vmem>>, vector<8x128xf32>
    tpu.vector_store %arg11[%c0_26, %c0_27], %72 {strides = array<i32>} : memref<8x128xf32, #tpu.memory_space<vmem>>, vector<8x128xf32>,
    return
  }
  func.func @transform_0(%arg0: i32) -> (i32, i32) {
    %c0_i32 = arith.constant 0 : i32
    %c0_i32_0 = arith.constant 0 : i32
    return %arg0, %c0_i32 : i32, i32
  }
  func.func @transform_1(%arg0: i32) -> (i32, i32) {
    %c0_i32 = arith.constant 0 : i32
    %c0_i32_0 = arith.constant 0 : i32
    %c0_i32_1 = arith.constant 0 : i32
    return %c0_i32, %c0_i32_0 : i32, i32
  }
  func.func @transform_2(%arg0: i32) -> (i32, i32) {
    %c0_i32 = arith.constant 0 : i32
    %c0_i32_0 = arith.constant 0 : i32
    %c0_i32_1 = arith.constant 0 : i32
    return %c0_i32, %c0_i32_0 : i32, i32
  }
  func.func @transform_3(%arg0: i32) -> (i32, i32) {
    %c0_i32 = arith.constant 0 : i32
    %c0_i32_0 = arith.constant 0 : i32
    %c0_i32_1 = arith.constant 0 : i32
    return %c0_i32, %c0_i32_0 : i32, i32
  }
  func.func @transform_4(%arg0: i32) -> (i32, i32) {
    %c0_i32 = arith.constant 0 : i32
    %c0_i32_0 = arith.constant 0 : i32
    %c0_i32_1 = arith.constant 0 : i32
    return %c0_i32, %c0_i32_0 : i32, i32
  }
  func.func @transform_5(%arg0: i32) -> (i32, i32) {
    %c0_i32 = arith.constant 0 : i32
    %c0_i32_0 = arith.constant 0 : i32
    %c0_i32_1 = arith.constant 0 : i32
    return %c0_i32, %c0_i32_0 : i32, i32
  }
  func.func @transform_6(%arg0: i32) -> (i32, i32) {
    %c0_i32 = arith.constant 0 : i32
    %c0_i32_0 = arith.constant 0 : i32
    %c0_i32_1 = arith.constant 0 : i32
    return %c0_i32, %c0_i32_0 : i32, i32
  }
  func.func @transform_7(%arg0: i32) -> (i32, i32) {
    %c0_i32 = arith.constant 0 : i32
    %c0_i32_0 = arith.constant 0 : i32
    %c0_i32_1 = arith.constant 0 : i32
    return %c0_i32, %c0_i32_0 : i32, i32
  }
  func.func @transform_8(%arg0: i32) -> (i32, i32) {
    %c0_i32 = arith.constant 0 : i32
    %c0_i32_0 = arith.constant 0 : i32
    %c0_i32_1 = arith.constant 0 : i32
    return %c0_i32, %c0_i32_0 : i32, i32
  }
  func.func @transform_9(%arg0: i32) -> (i32, i32) {
    %c0_i32 = arith.constant 0 : i32
    %c0_i32_0 = arith.constant 0 : i32
    %c0_i32_1 = arith.constant 0 : i32
    return %c0_i32, %c0_i32_0 : i32, i32
  }
  func.func @transform_10(%arg0: i32) -> (i32, i32) {
    %c0_i32 = arith.constant 0 : i32
    %c0_i32_0 = arith.constant 0 : i32
    return %arg0, %c0_i32 : i32, i32
  }
}

</mosaic_0001>

<bundles_post_ra>
// kernel: forward.1
= control target key start
LH: loop header
LB: loop body
LE: loop exit
PB: predicated region body
PF: predicated region fallthrough
CT: control target
= control target key end

     0   :  { %15 = vsyncpa [#allocation3], 0  ;;  %s1754_s13 = smov 0   ;;  %s2009_s0 = inlined_call_operand.vmem [shape: s32[128,3], index: 0, kind: input, shape index: {}]   ;;  %s2010_s1 = inlined_call_operand.hbm [shape: f32[384,128], index: 1, kind: input, shape index: {}]   ;;  %s2011_s2 = inlined_call_operand.vmem [shape: f32[1,128], index: 2, kind: input, shape index: {}]   ;;  %s2012_s3 = inlined_call_operand.vmem [shape: f32[8,128], index: 3, kind: input, shape index: {}]   ;;  %s2013_s4 = inlined_call_operand.vmem [shape: bf16[128,128], index: 4, kind: input, shape index: {}]   ;;  %s2014_s5 = inlined_call_operand.vmem [shape: f32[1,128], index: 5, kind: input, shape index: {}]   ;;  %s2015_s6 = inlined_call_operand.vmem [shape: bf16[32,128], index: 6, kind: input, shape index: {}]   ;;  %s2016_s7 = inlined_call_operand.vmem [shape: f32[1,128], index: 7, kind: input, shape index: {}]   ;;  %s2017_s8 = inlined_call_operand.vmem [shape: bf16[32,128], index: 8, kind: input, shape index: {}]   ;;  %s2018_s9 = inlined_call_operand.vmem [shape: f32[1,128], index: 9, kind: input, shape index: {}]   ;;  %s2019_s10 = inlined_call_operand.vmem [shape: f32[16,128], index: 10, kind: output, shape index: {}]  }
   0x1 LB: > { %s1760_s14 = sadd.s32 4294967295, %s1685_s13   ;;  %p1256_p0 = scmp.ge.s32.totalorder %s1685_s13, 1  ;;  %s1685_s13 = sphi %s1754_s13, %s21_s13  }
   0x2   : > { %p267_p1 = scmp.lt.s32.totalorder %s1685_s13, 3  ;;  %s1687_s15 = smov [#allocation2]  }
   0x3   : > { %s279_s16 = sshll.u32 %s1687_s15, 4  ;;  %p2020_p3 = scmp.eq.s32.totalorder %s1760_s14, 0  ;;  %s280_s16 = int_to_ptr.vmem [resolvable:$true] %s279_s16 }
   0x4   : > { %p1764_p2 = pnand %p1256_p0, %p267_p1  ;;  %s1647_s21 = scalar_lea.hbm %s2010_s1, 6144 }
   0x5   : > { %p1648_p6 = scmp.ne.s32.totalorder %s2010_s1, %s1647_s21  ;;  %p1654_p10 = scmp.lt.u32.totalorder %s1647_s21, %s2010_s1 }
   0x6   : > { %s2022_s17 = scalar_select %p1764_p2, 1, 0 }
   0x7   : > { %p1577_p4 = pneg %p1764_p2 }
   0x9   : > { %p1773_p5 = pnand %p2020_p3, %p1577_p4 }
   0xb   : > { %p1649_p7 = pneg %p1773_p5 }
   0xd   : > { %p1650_p8 = pnand %p1649_p7, %p1648_p6 }
   0xf   : > { %p1651_p9 = pneg %p1650_p8 }
  0x11   : > { %p1656_p11 = pnand %p1654_p10, %p1651_p9 }
  0x13   : > { %1659 = shalt.err (!%p1656_p11)
}
  0x14   : > { %s1660_s26 = scalar_lea.vmem %s280_s16, 6144  ;;  %p1668_p1 = scmp.lt.s32.totalorder %s280_s16, %s280_s16 }
  0x15   : > { %p1661_p12 = scmp.ne.s32.totalorder %s280_s16, %s1660_s26  ;;  %p1669_p4 = scmp.lt.s32.totalorder %s1660_s26, %s1660_s26 }
  0x17   : > { %p1663_p13 = pnand %p1661_p12, %p1649_p7  ;;  %p1670_p3 = por %p1669_p4, %p1668_p1 }
  0x19   : > { %p1664_p0 = pneg %p1663_p13 }
  0x1b   : > { %p1671_p2 = pnand %p1670_p3, %p1664_p0 }
  0x1d   : > { %1674 = shalt.err (!%p1671_p2)
}
  0x1e   : > { %s1688_s27 = smov 128   ;;  %s1689_s28 = smov 8  }
  0x1f   : > { %1580 = dma.hbm_to_vmem [thread:$0]  (!%p1773_p5), %s2010_s1, 6144, %s280_s16, [#allocation3], %s1688_s27, %s1688_s27, %s1689_s28  }
  0x20   : > { %p2024_p6 = scmp.ne.s32.totalorder %s2022_s17, 0 }
  0x21   : > { %p2025_p8 = scmp.eq.s32.totalorder (!%p2024_p6), %s1760_s14, 0 }
  0x22   : > { %328 = sbr.rel (%p2024_p6) target bundleno = 1868 (0x74c), region = 60 }
  0x29   : > { %1680 = dma.done.wait (%p2025_p8), [#allocation3], 6144   ;;  %p2026_p7 = pmov %p2025_p8 }
  0x2a   : > { %s1261_s11 = sshll.u32 %s1760_s14, 3  ;;  %v1690_v0 = vmov 1   ;;  %v546_v3 = vld [vmem:[#allocation2 + $0x80] sm:$0xff]  ;;  %v547_v4 = vld [vmem:[#allocation2 + $0x88] sm:$0xff]  ;;  %v548_v9 = vld [vmem:[#allocation2 + $0x90] sm:$0xff]  ;;  %v1691_v11 = vmov 0  }
  0x2b   : > { %1682 = vsyncadd (%p2026_p7), [#allocation3], 4294961152  ;;  %1605 = vset.pattern.permute.xlu1 %v1690_v0  ;;  %1603 = vset.pattern.permute.xlu0 %v1690_v0  ;;  %p366_p2 = scmp.lt.s32.totalorder %s1261_s11, 15  ;;  %v530_v5 = vld [vmem:[#allocation2] sm:$0xff]  ;;  %v531_v6 = vld [vmem:[#allocation2 + $0x8] sm:$0xff]  ;;  %v1509_v7 = vpack.c.bf16 %v547_v4, %v546_v3  ;;  %v1692_v38 = vmov 2  }
  0x2c   : > { %v1511_v8 = vpack.c.bf16 %v531_v6, %v530_v5  ;;  %v549_v10 = vld [vmem:[#allocation2 + $0x98] sm:$0xff]  ;;  %v532_v13 = vld [vmem:[#allocation2 + $0x10] sm:$0xff]  ;;  %v550_v15 = vld [vmem:[#allocation2 + $0xa0] sm:$0xff]  ;;  %s1696_s22 = smov 64   ;;  %s1697_s27 = smov 32  }
  0x2d   : > { %s2028_s11 = smov (!%p366_p2, %s1261_s11), 15  ;;  %v1513_v12 = vpack.c.bf16 %v549_v10, %v548_v9  ;;  %v533_v14 = vld [vmem:[#allocation2 + $0x18] sm:$0xff]  ;;  %v551_v16 = vld [vmem:[#allocation2 + $0xa8] sm:$0xff]  ;;  %1510 = vmatprep.subr.bf16.mxu0 %v1509_v7  ;;  %v534_v21 = vld [vmem:[#allocation2 + $0x20] sm:$0xff]  ;;  %s1698_s28 = smov 96  }
  0x2e   : > { %s1262_s12 = sshll.u32 %s2028_s11, 3  ;;  %1512 = vmatpush3.bf16.msra.mxu0 %v1511_v8  ;;  %v1515_v19 = vpack.c.bf16 %v533_v14, %v532_v13  ;;  %v1517_v20 = vpack.c.bf16 %v551_v16, %v550_v15  ;;  %v535_v22 = vld [vmem:[#allocation2 + $0x28] sm:$0xff]  ;;  %v552_v23 = vld [vmem:[#allocation2 + $0xb0] sm:$0xff]  ;;  %v553_v24 = vld [vmem:[#allocation2 + $0xb8] sm:$0xff]  ;;  %p371_p3 = scmp.lt.s32.totalorder %s1760_s14, 1 }
  0x2f   : > { %s1805_s17 = scalar_lea.vmem %s2009_s0, %s1262_s12  ;;  %1514 = vmatprep.subr.bf16.mxu0 %v1513_v12  ;;  %v562_v25 = vld [vmem:[#allocation2 + $0x100] sm:$0xff]  ;;  %v563_v26 = vld [vmem:[#allocation2 + $0x108] sm:$0xff]  ;;  %v1519_v28 = vpack.c.bf16 %v535_v22, %v534_v21  ;;  %v564_v30 = vld [vmem:[#allocation2 + $0x110] sm:$0xff]  ;;  %v1521_v31 = vpack.c.bf16 %v553_v24, %v552_v23 }
  0x30   : > { %v1808_v1 = vld [vmem:[%s1805_s17 + $0x8] sm:$0xff]  ;;  %v1811_v2 = vld [vmem:[%s1805_s17] sm:$0xff]  ;;  %v378_v17 = vld [vmem:[%s1805_s17 + $0x10] sm:$0xff]  ;;  %v1541_v29 = vpack.c.bf16 %v563_v26, %v562_v25  ;;  %v1693_v25 = vmov 1.0   ;;  %s2030_s14 = smov (!%p371_p3, %s1760_s14), 1 }
  0x31   : > { %438 = vperm.xlu1 %1605, %v1808_v1   ;;  %435 = vperm.xlu0 %1603, %v1811_v2   ;;  %v1821_v18 = vld [vmem:[%s1805_s17 + $0x28] sm:$0xff]  ;;  %v1827_v27 = vld [vmem:[%s1805_s17 + $0x18] sm:$0xff]  ;;  %v536_v32 = vld [vmem:[#allocation2 + $0x30] sm:$0xff] }
  0x32   : > { %1516 = vmatpush3.bf16.msra.mxu0 %v1515_v19  ;;  %v537_v33 = vld [vmem:[#allocation2 + $0x38] sm:$0xff]  ;;  %v554_v35 = vld [vmem:[#allocation2 + $0xc0] sm:$0xff]  ;;  %v555_v36 = vld [vmem:[#allocation2 + $0xc8] sm:$0xff]  ;;  %1542 = vmatprep.subr.bf16.mxu1 %v1541_v29 }
  0x33   : > { %1518 = vmatprep.subr.bf16.mxu0 %v1517_v20  ;;  %v565_v34 = vld [vmem:[#allocation2 + $0x118] sm:$0xff]  ;;  %v1832_v39 = vld [vmem:[%s1805_s17 + $0x20] sm:$0xff]  ;;  %v539_v41 = vld [vmem:[#allocation2 + $0x48] sm:$0xff]  ;;  %v1523_v42 = vpack.c.bf16 %v537_v33, %v536_v32  ;;  %v1525_v46 = vpack.c.bf16 %v555_v36, %v554_v35  ;;  %1544 = vmatpush3.bf16.msra.mxu1 %v1541_v29 }
  0x34   : > { %v1545_v37 = vpack.c.bf16 %v565_v34, %v564_v30  ;;  %v538_v40 = vld [vmem:[#allocation2 + $0x40] sm:$0xff]  ;;  %v556_v43 = vld [vmem:[#allocation2 + $0xd0] sm:$0xff]  ;;  %v567_v45 = vld [vmem:[#allocation2 + $0x128] sm:$0xff] }
  0x35   : > { %1606 = vset.pattern.permute.xlu1 %v1691_v11  ;;  %1604 = vset.pattern.permute.xlu0 %v1691_v11  ;;  %v566_v44 = vld [vmem:[#allocation2 + $0x120] sm:$0xff]  ;;  %v557_v47 = vld [vmem:[#allocation2 + $0xd8] sm:$0xff]  ;;  %v568_v48 = vld [vmem:[#allocation2 + $0x130] sm:$0xff]  ;;  %v1527_v53 = vpack.c.bf16 %v539_v41, %v538_v40 }
  0x36   : > { %390 = vperm.xlu1 %1606, %v1808_v1   ;;  %387 = vperm.xlu0 %1604, %v1811_v2   ;;  %v569_v49 = vld [vmem:[#allocation2 + $0x138] sm:$0xff]  ;;  %v540_v50 = vld [vmem:[#allocation2 + $0x50] sm:$0xff]  ;;  %v1549_v52 = vpack.c.bf16 %v567_v45, %v566_v44  ;;  %v558_v54 = vld [vmem:[#allocation2 + $0xe0] sm:$0xff]  ;;  %v1529_v56 = vpack.c.bf16 %v557_v47, %v556_v43  ;;  %v1694_v47 = vmov 0.0  }
  0x37   : > { %1520 = vmatpush3.bf16.msra.mxu0 %v1519_v28  ;;  %1546 = vmatprep.subr.bf16.mxu1 %v1545_v37  ;;  %v541_v51 = vld [vmem:[#allocation2 + $0x58] sm:$0xff]  ;;  %v559_v55 = vld [vmem:[#allocation2 + $0xe8] sm:$0xff]  ;;  %v570_v57 = vld [vmem:[#allocation2 + $0x140] sm:$0xff]  ;;  %v1553_v61 = vpack.c.bf16 %v569_v49, %v568_v48 }
  0x38   : > { %1522 = vmatprep.subr.bf16.mxu0 %v1521_v31  ;;  %1548 = vmatpush3.bf16.msra.mxu1 %v1545_v37  ;;  %v571_v58 = vld [vmem:[#allocation2 + $0x148] sm:$0xff]  ;;  %v542_v59 = vld [vmem:[#allocation2 + $0x60] sm:$0xff]  ;;  %v1531_v62 = vpack.c.bf16 %v541_v51, %v540_v50  ;;  %v1533_v63 = vpack.c.bf16 %v559_v55, %v558_v54  ;;  %v560_v3 = vld [vmem:[#allocation2 + $0xf0] sm:$0xff] }
  0x39   : > { %v543_v60 = vld [vmem:[#allocation2 + $0x68] sm:$0xff]  ;;  %1550 = vmatprep.subr.bf16.mxu1 %v1549_v52  ;;  %v561_v4 = vld [vmem:[#allocation2 + $0xf8] sm:$0xff]  ;;  %v1557_v5 = vpack.c.bf16 %v571_v58, %v570_v57  ;;  %v572_v7 = vld [vmem:[#allocation2 + $0x150] sm:$0xff] }
  0x3a   : > { %1607 = vset.pattern.permute.xlu1 %v1690_v0  ;;  %1609 = vset.pattern.permute.xlu0 %v1690_v0  ;;  %v1535_v6 = vpack.c.bf16 %v543_v60, %v542_v59  ;;  %v573_v8 = vld [vmem:[#allocation2 + $0x158] sm:$0xff]  ;;  %v382_v10 = vld [vmem:[%s1805_s17 + $0x30] sm:$0xff]  ;;  %v1537_v12 = vpack.c.bf16 %v561_v4, %v560_v3  ;;  %v575_v15 = vld [vmem:[#allocation2 + $0x168] sm:$0xff] }
  0x3b   : > { %441 = vperm.xlu1 %1607, %v378_v17   ;;  %450 = vperm.xlu0 %1609, %v1821_v18   ;;  %v545_v9 = vld [vmem:[#allocation2 + $0x78] sm:$0xff]  ;;  %v1561_v13 = vpack.c.bf16 %v573_v8, %v572_v7  ;;  %v1620_v48 = vld [vmem:[%s2013_s4 + $0x8] sm:$0xff]   ;;  %v1621_v49 = vld [vmem:[%s2013_s4 + $0x10] sm:$0xff]  }
  0x3c   : > { %1524 = vmatpush3.bf16.msra.mxu0 %v1523_v42  ;;  %1552 = vmatpush3.bf16.msra.mxu1 %v1549_v52  ;;  %v577_v19 = vld [vmem:[#allocation2 + $0x178] sm:$0xff]  ;;  %v1623_v51 = vld [vmem:[%s2013_s4 + $0x20] sm:$0xff]   ;;  %v1624_v52 = vld [vmem:[%s2013_s4 + $0x28] sm:$0xff]  }
  0x3d   : > { %1526 = vmatprep.subr.bf16.mxu0 %v1525_v46  ;;  %1554 = vmatprep.subr.bf16.mxu1 %v1553_v61  ;;  %v383_v21 = vld [vmem:[%s1805_s17 + $0x38] sm:$0xff]  ;;  %v1619_v46 = vld [vmem:[%s2013_s4] sm:$0xff]   ;;  %s1263_s17 = sshll.u32 %s2030_s14, 3 }
  0x3e   : > { %v1622_v50 = vld [vmem:[%s2013_s4 + $0x18] sm:$0xff]   ;;  %v1944_v3 = vld [vmem:[%s2011_s2] ss:$0 sm:$0xff] }
  0x3f   : > { %444 = vperm.xlu1 %1607, %v1827_v27   ;;  %1611 = vset.pattern.permute.xlu0 %v1692_v38  ;;  %v1626_v54 = vld [vmem:[%s2013_s4 + $0x38] sm:$0xff]  }
  0x40   : > { %489 = vperm.xlu0 %1611, %v378_v17   ;;  %1528 = vmatpush3.bf16.msra.mxu0 %v1527_v53  ;;  %v1625_v53 = vld [vmem:[%s2013_s4 + $0x30] sm:$0xff]  }
  0x41   : > { %1530 = vmatprep.subr.bf16.mxu0 %v1529_v56  ;;  %1556 = vmatpush3.bf16.msra.mxu1 %v1553_v61 }
  0x42   : > { %1558 = vmatprep.subr.bf16.mxu1 %v1557_v5 }
  0x43   : > { %447 = vperm.xlu1 %1607, %v1832_v39  }
  0x44   : > { %1612 = vset.pattern.permute.xlu0 %v1691_v11  ;;  %1532 = vmatpush3.bf16.msra.mxu0 %v1531_v62 }
  0x45   : > { %393 = vperm.xlu0 %1612, %v378_v17   ;;  %1534 = vmatprep.subr.bf16.mxu0 %v1533_v63  ;;  %v576_v17 = vld [vmem:[#allocation2 + $0x170] sm:$0xff] }
  0x46   : > { %1560 = vmatpush3.bf16.msra.mxu1 %v1557_v5  ;;  %v1569_v20 = vpack.c.bf16 %v577_v19, %v576_v17 }
  0x47   : > { %1608 = vset.pattern.permute.xlu1 %v1692_v38  ;;  %1562 = vmatprep.subr.bf16.mxu1 %v1561_v13 }
  0x48   : > { %483 = vperm.xlu1 %1608, %v1811_v2   ;;  %v544_v2 = vld [vmem:[#allocation2 + $0x70] sm:$0xff]  ;;  %1536 = vmatpush3.bf16.msra.mxu0 %v1535_v6 }
  0x49   : > { %396 = vperm.xlu0 %1612, %v1827_v27   ;;  %v1539_v14 = vpack.c.bf16 %v545_v9, %v544_v2  ;;  %1538 = vmatprep.subr.bf16.mxu0 %v1537_v12 }
  0x4a   : > { %1564 = vmatpush3.bf16.msra.mxu1 %v1561_v13  ;;  %v1951_v13 = vld [vmem:[%s2012_s3] sm:$0xff] }
  0x4c   : > { %486 = vperm.xlu1 %1608, %v1808_v1   ;;  %v574_v1 = vld [vmem:[#allocation2 + $0x160] sm:$0xff]  ;;  %1540 = vmatpush3.bf16.msra.mxu0 %v1539_v14 }
  0x4d   : > { %399 = vperm.xlu0 %1612, %v1832_v39   ;;  %v1565_v16 = vpack.c.bf16 %v575_v15, %v574_v1  ;;  %1473 = vmatprep.subr.bf16.mxu0 %v1694_v47 }
  0x4f   : > { %1566 = vmatprep.subr.bf16.mxu1 %v1565_v16 }
  0x50   : > { %1610 = vset.pattern.permute.xlu1 %v1691_v11  ;;  %1568 = vmatpush3.bf16.msra.mxu1 %v1565_v16 }
  0x51   : > { %402 = vperm.xlu1 %1610, %v1821_v18   ;;  %405 = vperm.xlu0 %1612, %v382_v10  }
  0x52   : > { %1570 = vmatprep.subr.bf16.mxu1 %v1569_v20 }
  0x54   : > { %1572 = vmatpush3.bf16.msra.mxu1 %v1569_v20 }
  0x55   : > { %1613 = vset.pattern.permute.xlu1 %v1690_v0  ;;  %1616 = vset.pattern.permute.xlu0 %v1692_v38 }
  0x56   : > { %453 = vperm.xlu1 %1613, %v382_v10   ;;  %498 = vperm.xlu0 %1616, %v1821_v18   ;;  %v384_v18 = vlaneseq }
  0x57   : > { %1493 = vmatprep.subr.bf16.mxu1 %v1694_v47 }
  0x58   : > { %v1854_v22 = vand.u32 127, %v384_v18 }
  0x5a   : > { %1614 = vset.pattern.permute.xlu1 %v1692_v38  ;;  %504 = vperm.xlu0 %1616, %v383_v21  }
  0x5b   : > { %492 = vperm.xlu1 %1614, %v1827_v27  }
  0x5f   : > { %495 = vperm.xlu1 %1614, %v1832_v39  }
  0x63   : > { %1615 = vset.pattern.permute.xlu1 %v1690_v0 }
  0x64   : > { %456 = vperm.xlu1 %1615, %v383_v21  }
  0x68   : > { %1617 = vset.pattern.permute.xlu1 %v1691_v11 }
  0x69   : > { %408 = vperm.xlu1 %1617, %v383_v21  }
  0x6d   : > { %1618 = vset.pattern.permute.xlu1 %v1692_v38 }
  0x6e   : > { %501 = vperm.xlu1 %1618, %v382_v10  }
  0xb0   : > { %v439_v23 = vpop.permute.xlu1 %438  ;;  %v436_v24 = vpop.permute.xlu0 %435 }
  0xb1   : > { %vm458_vm0 = vcmp.eq.s32.totalorder %v1854_v22, %v436_v24  ;;  %vm459_vm2 = vcmp.eq.s32.totalorder %v1854_v22, %v439_v23 }
  0xb2   : > { %1289 = vmatprep.mubr.msk.f32.mxu0 %vm458_vm0, %v1693_v25 }
  0xb5   : > { %v391_v26 = vpop.permute.xlu1 %390  ;;  %v388_v27 = vpop.permute.xlu0 %387 }
  0xb6   : > { %vm410_vm1 = vcmp.eq.s32.totalorder %v1854_v22, %v388_v27  ;;  %vm411_vm3 = vcmp.eq.s32.totalorder %v1854_v22, %v391_v26 }
  0xb7   : > { %1290 = vmatmul.mubr.msk.f32.vlgmr.msra.gmra.mrb[0].mxu0 %vm410_vm1, %v1693_v25 }
  0xb8   : > { %1291 = vmatprep.mubr.msk.f32.mxu0 %vm459_vm2, %v1693_v25  ;;  %1474 = vmatpush3.bf16.msra.mxu0 %v1619_v46 }
  0xb9   : > { %1475 = vmatprep.subr.bf16.mxu0 %v1694_v47 }
  0xba   : > { %v442_v0 = vpop.permute.xlu1 %441  ;;  %v451_v11 = vpop.permute.xlu0 %450 }
  0xbb   : > { %vm460_vm4 = vcmp.eq.s32.totalorder %v1854_v22, %v442_v0  ;;  %1292 = vmatmul.mubr.msk.f32.gmra.mrb[2].mxu0 %vm411_vm3, %v1693_v25  ;;  %vm463_vm11 = vcmp.eq.s32.totalorder %v1854_v22, %v451_v11 }
  0xbc   : > { %1293 = vmatprep.mubr.msk.f32.mxu0 %vm460_vm4, %v1693_v25  ;;  %1476 = vmatpush3.bf16.msra.mxu0 %v1620_v48 }
  0xbd   : > { %1477 = vmatprep.subr.bf16.mxu0 %v1694_v47 }
  0xbe   : > { %v445_v28 = vpop.permute.xlu1 %444 }
  0xbf   : > { %v490_v29 = vpop.permute.xlu0 %489  ;;  %vm461_vm6 = vcmp.eq.s32.totalorder %v1854_v22, %v445_v28 }
  0xc0   : > { %vm508_vm10 = vcmp.eq.s32.totalorder %v1854_v22, %v490_v29  ;;  %1478 = vmatpush3.bf16.msra.mxu0 %v1621_v49 }
  0xc1   : > { %1479 = vmatprep.subr.bf16.mxu0 %v1694_v47 }
  0xc2   : > { %v448_v30 = vpop.permute.xlu1 %447 }
  0xc3   : > { %vm462_vm9 = vcmp.eq.s32.totalorder %v1854_v22, %v448_v30 }
  0xc4   : > { %v394_v31 = vpop.permute.xlu0 %393  ;;  %1480 = vmatpush3.bf16.msra.mxu0 %v1622_v50 }
  0xc5   : > { %vm412_vm5 = vcmp.eq.s32.totalorder %v1854_v22, %v394_v31  ;;  %1481 = vmatprep.subr.bf16.mxu0 %v1694_v47 }
  0xc6   : > { %1294 = vmatmul.mubr.msk.f32.gmra.mrb[4].mxu0 %vm412_vm5, %v1693_v25 }
  0xc7   : > { %v484_v32 = vpop.permute.xlu1 %483  ;;  %1295 = vmatprep.mubr.msk.f32.mxu0 %vm461_vm6, %v1693_v25 }
  0xc8   : > { %v397_v33 = vpop.permute.xlu0 %396  ;;  %vm506_vm7 = vcmp.eq.s32.totalorder %v1854_v22, %v484_v32  ;;  %1482 = vmatpush3.bf16.msra.mxu0 %v1623_v51 }
  0xc9   : > { %vm413_vm8 = vcmp.eq.s32.totalorder %v1854_v22, %v397_v33  ;;  %1461 = vmatprep.mubr.msk.f32.mxu1 %vm506_vm7, %v1693_v25  ;;  %1483 = vmatprep.subr.bf16.mxu0 %v1694_v47 }
  0xca   : > { %1296 = vmatmul.mubr.msk.f32.gmra.mrb[6].mxu0 %vm413_vm8, %v1693_v25  ;;  %vm1695_vm8 = vmmov 0  }
  0xcb   : > { %v487_v34 = vpop.permute.xlu1 %486  ;;  %1297 = vmatprep.mubr.msk.f32.mxu0 %vm462_vm9, %v1693_v25  ;;  %vm907_vm9 = vcmask 1041409  }
  0xcc   : > { %vm507_vm12 = vcmp.eq.s32.totalorder %v1854_v22, %v487_v34  ;;  %v400_v35 = vpop.permute.xlu0 %399  ;;  %1484 = vmatpush3.bf16.msra.mxu0 %v1624_v52 }
  0xcd   : > { %vm414_vm13 = vcmp.eq.s32.totalorder %v1854_v22, %v400_v35  ;;  %1462 = vmatmul.mubr.msk.f32.vlgmr.msra.gmra.mrb[0].mxu1 %vm507_vm12, %v1693_v25  ;;  %1485 = vmatprep.subr.bf16.mxu0 %v1694_v47  ;;  %vm913_vm12 = vcmask 1044484  }
  0xce   : > { %1298 = vmatmul.mubr.msk.f32.gmra.mrb[8].mxu0 %vm414_vm13, %v1693_v25  ;;  %1464 = vmatprep.mubr.msk.f32.mxu1 %vm508_vm10, %v1693_v25  ;;  %vm909_vm10 = vcmask 1042434   ;;  %vm915_vm13 = vcmask 1045509  }
  0xcf   : > { %1299 = vmatprep.mubr.msk.f32.mxu0 %vm463_vm11, %v1693_v25  ;;  %vm911_vm11 = vcmask 1043459  }
  0xd0   : > { %v403_v36 = vpop.permute.xlu1 %402  ;;  %v406_v37 = vpop.permute.xlu0 %405  ;;  %1486 = vmatpush3.bf16.msra.mxu0 %v1625_v53 }
  0xd1   : > { %vm415_vm14 = vcmp.eq.s32.totalorder %v1854_v22, %v403_v36  ;;  %vm416_vm15 = vcmp.eq.s32.totalorder %v1854_v22, %v406_v37  ;;  %1487 = vmatprep.subr.bf16.mxu0 %v1694_v47 }
  0xd2   : > { %1300 = vmatmul.mubr.msk.f32.gmra.mrb[10].mxu0 %vm415_vm14, %v1693_v25  ;;  %vm917_vm14 = vcmask 1046534  }
  0xd4   : > { %1488 = vmatpush3.bf16.msra.mxu0 %v1626_v54 }
  0xd5   : > { %v454_v38 = vpop.permute.xlu1 %453  ;;  %v499_v40 = vpop.permute.xlu0 %498 }
  0xd6   : > { %vm464_vm0 = vcmp.eq.s32.totalorder %v1854_v22, %v454_v38  ;;  %vm511_vm2 = vcmp.eq.s32.totalorder %v1854_v22, %v499_v40 }
  0xd7   : > { %1301 = vmatprep.mubr.msk.f32.mxu0 %vm464_vm0, %v1693_v25  ;;  %vm1056_vm0 = vcmask 261120  }
  0xd8   : > { %1302 = vmatmul.mubr.msk.f32.gmra.mrb[12].mxu0 %vm416_vm15, %v1693_v25  ;;  %vm919_vm15 = vcmask 1047559  }
  0xd9   : > { %v505_v44 = vpop.permute.xlu0 %504 }
  0xda   : > { %v493_v39 = vpop.permute.xlu1 %492  ;;  %vm513_vm7 = vcmp.eq.s32.totalorder %v1854_v22, %v505_v44 }
  0xdb   : > { %vm509_vm1 = vcmp.eq.s32.totalorder %v1854_v22, %v493_v39 }
  0xdc   : > { %1465 = vmatmul.mubr.msk.f32.gmra.mrb[2].mxu1 %vm509_vm1, %v1693_v25 }
  0xde   : > { %v496_v41 = vpop.permute.xlu1 %495 }
  0xdf   : > { %vm510_vm3 = vcmp.eq.s32.totalorder %v1854_v22, %v496_v41 }
  0xe0   : > { %1467 = vmatprep.mubr.msk.f32.mxu1 %vm510_vm3, %v1693_v25 }
  0xe1   : > { %1468 = vmatmul.mubr.msk.f32.gmra.mrb[4].mxu1 %vm511_vm2, %v1693_v25 }
  0xe3   : > { %v457_v42 = vpop.permute.xlu1 %456 }
  0xe4   : > { %vm465_vm4 = vcmp.eq.s32.totalorder %v1854_v22, %v457_v42 }
  0xe5   : > { %1303 = vmatprep.mubr.msk.f32.mxu0 %vm465_vm4, %v1693_v25 }
  0xe8   : > { %v409_v43 = vpop.permute.xlu1 %408 }
  0xe9   : > { %vm417_vm5 = vcmp.eq.s32.totalorder %v1854_v22, %v409_v43 }
  0xea   : > { %1304 = vmatmul.mubr.msk.f32.gmra.mrb[14].mxu0 %vm417_vm5, %v1693_v25 }
  0xeb   : > { %1489 = vmatprep.mubr.msk.bf16.mxu0 %vm1695_vm8, %v1694_v47 }
  0xed   : > { %v502_v45 = vpop.permute.xlu1 %501 }
  0xee   : > { %vm512_vm6 = vcmp.eq.s32.totalorder %v1854_v22, %v502_v45 }
  0xef   : > { %1470 = vmatprep.mubr.msk.f32.mxu1 %vm512_vm6, %v1693_v25 }
  0xf0   : > { %1471 = vmatmul.mubr.msk.f32.gmra.mrb[6].mxu1 %vm513_vm7, %v1693_v25 }
  0xf1   : > { %1497 = vmatprep.mubr.msk.bf16.mxu1 %vm1695_vm8, %v1694_v47 }
 0x18a   : > { %v1366_v55 = vpop.f32.mrb[0].mxu0 }
 0x18b   : > { %v1367_v56 = vpop.f32.mrb[1].mxu0 }
 0x18c   : > { %v1368_v57 = vadd.f32 %v1367_v56, %v1366_v55 }
 0x18e   : > { %v1369_v58 = vpop.f32.mrb[2].mxu0  ;;  %v652_v5 = vadd.f32 %v1368_v57, %v1944_v3 }
 0x18f   : > { %v1370_v59 = vpop.f32.mrb[3].mxu0 }
 0x190   : > { %v1371_v60 = vadd.f32 %v1370_v59, %v1369_v58 }
 0x192   : > { %v657_v7 = vadd.f32 %v1371_v60, %v1944_v3 }
 0x199   : > { %v1372_v61 = vpop.f32.mrb[4].mxu0 }
 0x19a   : > { %v1373_v62 = vpop.f32.mrb[5].mxu0 }
 0x19b   : > { %v1374_v63 = vadd.f32 %v1373_v62, %v1372_v61 }
 0x19d   : > { %v1375_v4 = vpop.f32.mrb[6].mxu0  ;;  %v662_v32 = vadd.f32 %v1374_v63, %v1944_v3 }
 0x19e   : > { %v1376_v6 = vpop.f32.mrb[7].mxu0 }
 0x19f   : > { %v1377_v8 = vadd.f32 %v1376_v6, %v1375_v4 }
 0x1a0   : > { %v1463_v2 = vpop.f32.mrb[0].mxu1 }
 0x1a1   : > { %v762_v9 = vadd.f32 %v1463_v2, %v657_v7  ;;  %v756_v10 = vpop.f32.mrb[1].mxu1  ;;  %v1378_v12 = vpop.f32.mrb[8].mxu0  ;;  %v667_v29 = vadd.f32 %v1377_v8, %v1944_v3 }
 0x1a2   : > { %v757_v14 = vadd.f32 %v756_v10, %v652_v5  ;;  %v1379_v1 = vpop.f32.mrb[9].mxu0 }
 0x1a3   : > { %v796_v15 = vmax.f32 %v762_v9, 0.0  ;;  %v1380_v16 = vadd.f32 %v1379_v1, %v1378_v12 }
 0x1a4   : > { %v795_v17 = vmax.f32 %v757_v14, 0.0 }
 0x1a5   : > { %v805_v19 = vmul.f32 %v1951_v13, %v796_v15  ;;  %v1381_v20 = vpop.f32.mrb[10].mxu0  ;;  %v672_v50 = vadd.f32 %v1380_v16, %v1944_v3 }
 0x1a6   : > { %v804_v21 = vmul.f32 %v1951_v13, %v795_v17  ;;  %v1382_v18 = vpop.f32.mrb[11].mxu0 }
 0x1a7   : > { %v818_v22 = vrot.slane %v805_v19, 4  ;;  %v1383_v23 = vadd.f32 %v1382_v18, %v1381_v20 }
 0x1a8   : > { %v812_v24 = vrot.slane %v804_v21, 4 }
 0x1a9   : > { %v819_v25 = vmax.f32 %v805_v19, %v818_v22  ;;  %v677_v45 = vadd.f32 %v1383_v23, %v1944_v3 }
 0x1aa   : > { %v813_v26 = vmax.f32 %v804_v21, %v812_v24 }
 0x1ab   : > { %v820_v27 = vrot.slane %v819_v25, 2  ;;  %v1384_v0 = vpop.f32.mrb[12].mxu0 }
 0x1ac   : > { %v814_v11 = vrot.slane %v813_v26, 2  ;;  %v1385_v28 = vpop.f32.mrb[13].mxu0 }
 0x1ad   : > { %v821_v30 = vmax.f32 %v819_v25, %v820_v27  ;;  %v1386_v31 = vadd.f32 %v1385_v28, %v1384_v0 }
 0x1ae   : > { %v815_v33 = vmax.f32 %v813_v26, %v814_v11 }
 0x1af   : > { %v822_v34 = vrot.slane %v821_v30, 1  ;;  %v1466_v35 = vpop.f32.mrb[2].mxu1  ;;  %v682_v28 = vadd.f32 %v1386_v31, %v1944_v3 }
 0x1b0   : > { %v816_v36 = vrot.slane %v815_v33, 1  ;;  %v772_v37 = vadd.f32 %v1466_v35, %v667_v29  ;;  %v766_v38 = vpop.f32.mrb[3].mxu1 }
 0x1b1   : > { %v823_v39 = vmax.f32 %v821_v30, %v822_v34  ;;  %v767_v40 = vadd.f32 %v766_v38, %v662_v32 }
 0x1b2   : > { %v817_v41 = vmax.f32 %v815_v33, %v816_v36  ;;  %v798_v42 = vmax.f32 %v772_v37, 0.0 }
 0x1b3   : > { %v861_v43 = vpack.c.bf16 %v823_v39, %v823_v39  ;;  %v797_v44 = vmax.f32 %v767_v40, 0.0 }
 0x1b4   : > { %v860_v46 = vpack.c.bf16 %v817_v41, %v817_v41  ;;  %v807_v48 = vmul.f32 %v1951_v13, %v798_v42  ;;  %v1469_v49 = vpop.f32.mrb[4].mxu1 }
 0x1b5   : > { %v900_v51 = vunpack.c.l.b16 %v861_v43  ;;  %v806_v52 = vmul.f32 %v1951_v13, %v797_v44  ;;  %v782_v53 = vadd.f32 %v1469_v49, %v677_v45  ;;  %v776_v54 = vpop.f32.mrb[5].mxu1 }
 0x1b6   : > { %v899_v55 = vunpack.c.l.b16 %v860_v46  ;;  %v830_v56 = vrot.slane %v807_v48, 4  ;;  %v777_v57 = vadd.f32 %v776_v54, %v672_v50 }
 0x1b7   : > { %v824_v58 = vrot.slane %v806_v52, 4  ;;  %v800_v59 = vmax.f32 %v782_v53, 0.0 }
 0x1b8   : > { %v908_v60 = vsel %vm907_vm9, %v900_v51, %v899_v55  ;;  %v831_v61 = vmax.f32 %v807_v48, %v830_v56  ;;  %v799_v62 = vmax.f32 %v777_v57, 0.0 }
 0x1b9   : > { %v825_v63 = vmax.f32 %v806_v52, %v824_v58  ;;  %v809_v4 = vmul.f32 %v1951_v13, %v800_v59 }
 0x1ba   : > { %v832_v5 = vrot.slane %v831_v61, 2  ;;  %v808_v6 = vmul.f32 %v1951_v13, %v799_v62 }
 0x1bb   : > { %v826_v7 = vrot.slane %v825_v63, 2  ;;  %v842_v8 = vrot.slane %v809_v4, 4 }
 0x1bc   : > { %v833_v2 = vmax.f32 %v831_v61, %v832_v5  ;;  %v836_v9 = vrot.slane %v808_v6, 4 }
 0x1bd   : > { %v827_v10 = vmax.f32 %v825_v63, %v826_v7  ;;  %v843_v12 = vmax.f32 %v809_v4, %v842_v8  ;;  %v1387_v14 = vpop.f32.mrb[14].mxu0  ;;  %v1313_v7 = vld [vmem:[%s2014_s5] ss:$0 sm:$0xff] }
 0x1be   : > { %v834_v1 = vrot.slane %v833_v2, 1  ;;  %v837_v15 = vmax.f32 %v808_v6, %v836_v9  ;;  %v1388_v16 = vpop.f32.mrb[15].mxu0 }
 0x1bf   : > { %v828_v17 = vrot.slane %v827_v10, 1  ;;  %v844_v19 = vrot.slane %v843_v12, 2  ;;  %v1389_v20 = vadd.f32 %v1388_v16, %v1387_v14 }
 0x1c0   : > { %v835_v21 = vmax.f32 %v833_v2, %v834_v1  ;;  %v838_v18 = vrot.slane %v837_v15, 2 }
 0x1c1   : > { %v829_v22 = vmax.f32 %v827_v10, %v828_v17  ;;  %v845_v23 = vmax.f32 %v843_v12, %v844_v19  ;;  %v687_v24 = vadd.f32 %v1389_v20, %v1944_v3 }
 0x1c2   : > { %v863_v25 = vpack.c.bf16 %v835_v21, %v835_v21  ;;  %v839_v26 = vmax.f32 %v837_v15, %v838_v18  ;;  %v1627_v21 = vld [vmem:[%s2015_s6] sm:$0xff]   ;;  %v1628_v18 = vld [vmem:[%s2015_s6 + $0x8] sm:$0xff]  }
 0x1c3   : > { %v862_v27 = vpack.c.bf16 %v829_v22, %v829_v22  ;;  %v846_v0 = vrot.slane %v845_v23, 1  ;;  %v1472_v11 = vpop.f32.mrb[6].mxu1  ;;  %1494 = vmatpush3.bf16.msra.mxu1 %v1627_v21 }
 0x1c4   : > { %v840_v29 = vrot.slane %v839_v26, 1  ;;  %v792_v30 = vadd.f32 %v1472_v11, %v687_v24  ;;  %v786_v32 = vpop.f32.mrb[7].mxu1  ;;  %v902_v36 = vunpack.c.l.b16 %v863_v25  ;;  %1495 = vmatprep.subr.bf16.mxu1 %v1694_v47 }
 0x1c5   : > { %v901_v33 = vunpack.c.l.b16 %v862_v27  ;;  %v847_v34 = vmax.f32 %v845_v23, %v846_v0  ;;  %v787_v35 = vadd.f32 %v786_v32, %v682_v28  ;;  %v1323_v27 = vld [vmem:[%s2016_s7] ss:$0 sm:$0xff] }
 0x1c6   : > { %v841_v37 = vmax.f32 %v839_v26, %v840_v29  ;;  %v802_v38 = vmax.f32 %v792_v30, 0.0 }
 0x1c7   : > { %v910_v39 = vsel %vm909_vm10, %v901_v33, %v908_v60  ;;  %v865_v40 = vpack.c.bf16 %v847_v34, %v847_v34  ;;  %v801_v41 = vmax.f32 %v787_v35, 0.0  ;;  %1496 = vmatpush3.bf16.msra.mxu1 %v1628_v18 }
 0x1c8   : > { %v864_v42 = vpack.c.bf16 %v841_v37, %v841_v37  ;;  %v912_v43 = vsel %vm911_vm11, %v902_v36, %v910_v39  ;;  %v811_v44 = vmul.f32 %v1951_v13, %v802_v38  ;;  %1501 = vmatprep.subr.bf16.mxu1 %v1694_v47  ;;  %v1629_v39 = vld [vmem:[%s2017_s8] sm:$0xff]  }
 0x1c9   : > { %v810_v3 = vmul.f32 %v1951_v13, %v801_v41  ;;  %v904_v46 = vunpack.c.l.b16 %v865_v40  ;;  %v1630_v40 = vld [vmem:[%s2017_s8 + $0x8] sm:$0xff]  }
 0x1ca   : > { %v903_v31 = vunpack.c.l.b16 %v864_v42  ;;  %v854_v45 = vrot.slane %v811_v44, 4 }
 0x1cb   : > { %v848_v48 = vrot.slane %v810_v3, 4 }
 0x1cc   : > { %v914_v49 = vsel %vm913_vm12, %v903_v31, %v912_v43  ;;  %v855_v50 = vmax.f32 %v811_v44, %v854_v45  ;;  %v1328_v31 = vld [vmem:[%s2018_s9] ss:$0 sm:$0xff] }
 0x1cd   : > { %v849_v51 = vmax.f32 %v810_v3, %v848_v48  ;;  %v916_v52 = vsel %vm915_vm13, %v904_v46, %v914_v49 }
 0x1ce   : > { %v856_v53 = vrot.slane %v855_v50, 2 }
 0x1cf   : > { %v850_v54 = vrot.slane %v849_v51, 2 }
 0x1d0   : > { %v857_v55 = vmax.f32 %v855_v50, %v856_v53 }
 0x1d1   : > { %v851_v56 = vmax.f32 %v849_v51, %v850_v54 }
 0x1d2   : > { %v858_v57 = vrot.slane %v857_v55, 1 }
 0x1d3   : > { %v852_v58 = vrot.slane %v851_v56, 1 }
 0x1d4   : > { %v859_v59 = vmax.f32 %v857_v55, %v858_v57 }
 0x1d5   : > { %v853_v60 = vmax.f32 %v851_v56, %v852_v58 }
 0x1d6   : > { %v867_v61 = vpack.c.bf16 %v859_v59, %v859_v59 }
 0x1d7   : > { %v866_v62 = vpack.c.bf16 %v853_v60, %v853_v60 }
 0x1d8   : > { %v906_v63 = vunpack.c.l.b16 %v867_v61 }
 0x1d9   : > { %v905_v13 = vunpack.c.l.b16 %v866_v62 }
 0x1db   : > { %v918_v4 = vsel %vm917_vm14, %v905_v13, %v916_v52 }
 0x1dc   : > { %v920_v5 = vsel %vm919_vm15, %v906_v63, %v918_v4 }
 0x1dd   : > { %v921_v6 = vpack.c.b16 %v920_v5, %v920_v5 }
 0x1df   : > { %1490 = vmatmul.mubr.bf16.vlgmr.msra.gmra.mrb[16].mxu0 %v921_v6 }
 0x2b2   : > { %v1005_v8 = vpop.f32.mrb[16].mxu0 }
 0x2b3   : > { %v1006_v2 = vadd.f32 %v1313_v7, %v1005_v8  ;;  %v1491_v9 = vpop.f32.mrb[17].mxu0 }
 0x2b4   : > { %v1008_v10 = vpop.f32.mrb[18].mxu0 }
 0x2b5   : > { %1631 = vtanh.f32 %v1006_v2  ;;  %v1492_v12 = vpop.f32.mrb[19].mxu0  ;;  %v1322_v1 = vmul.f32 -1.442695, %v1006_v2 }
 0x2b7   : > { %1633 = vpow2.f32 %v1322_v1 }
 0x2bf   : > { %v1632_v14 = vpop.eup %1631 }
 0x2c0   : > { %1019 = vrot.lane.b32.xlu1 %v1632_v14, %s1696_s22 }
 0x2c1   : > { %v1634_v15 = vpop.eup %1633 }
 0x2c2   : > { %v1014_v16 = vadd.f32 1.0, %v1634_v15 }
 0x2c4   : > { %1635 = vrcp.f32 %v1014_v16 }
 0x2ce   : > { %v1636_v17 = vpop.eup %1635 }
 0x332   : > { %v1020_v19 = vpop.permute.xlu1 %1019 }
 0x333   : > { %v1022_v20 = vmul.f32 %v1636_v17, %v1020_v19 }
 0x335   : > { %1637 = vtanh.f32 %v1022_v20 }
 0x33f   : > { %v1638_v22 = vpop.eup %1637 }
 0x340   : > { %1025 = vrot.lane.b32.xlu0 %v1638_v22, %s1697_s27 }
 0x3b2   : > { %v1026_v23 = vpop.permute.xlu0 %1025 }
 0x3b3   : > { %v1028_v24 = vmul.f32 %v1636_v17, %v1026_v23 }
 0x3b5   : > { %v1029_v25 = vpack.c.bf16 %v1028_v24, %v1028_v24 }
 0x3b7   : > { %1042 = vrot.lane.b32.xlu1 %v1029_v25, %s1698_s28 }
 0x429   : > { %v1043_v26 = vpop.permute.xlu1 %1042 }
 0x42a   : > { %1498 = vmatmul.mubr.msk.bf16.vlgmr.msra.gmra.mrb[8].mxu1 %vm1056_vm0, %v1043_v26 }
 0x42b   : > { %1505 = vmatprep.mubr.msk.bf16.mxu1 %vm1695_vm8, %v1694_v47  ;;  %1502 = vmatpush3.bf16.msra.mxu1 %v1629_v39 }
 0x42c   : > { %1503 = vmatprep.subr.bf16.mxu1 %v1694_v47 }
 0x42f   : > { %1504 = vmatpush3.bf16.msra.mxu1 %v1630_v40 }
 0x4fd   : > { %v1094_v0 = vpop.f32.mrb[8].mxu1 }
 0x4fe   : > { %v1095_v11 = vadd.f32 %v1323_v27, %v1094_v0  ;;  %v1499_v28 = vpop.f32.mrb[9].mxu1 }
 0x4ff   : > { %v1097_v29 = vpop.f32.mrb[10].mxu1 }
 0x500   : > { %1639 = vtanh.f32 %v1095_v11  ;;  %v1500_v30 = vpop.f32.mrb[11].mxu1  ;;  %v1327_v33 = vmul.f32 -1.442695, %v1095_v11 }
 0x502   : > { %1641 = vpow2.f32 %v1327_v33 }
 0x50a   : > { %v1640_v32 = vpop.eup %1639 }
 0x50b   : > { %1108 = vrot.lane.b32.xlu0 %v1640_v32, %s1696_s22  ;;  %s374_s22 = scalar_lea.vmem %s2019_s10, %s1263_s17 }
 0x50c   : > { %v1642_v34 = vpop.eup %1641 }
 0x50d   : > { %v1103_v35 = vadd.f32 1.0, %v1642_v34 }
 0x50f   : > { %1643 = vrcp.f32 %v1103_v35 }
 0x519   : > { %v1644_v36 = vpop.eup %1643 }
 0x57d   : > { %v1109_v37 = vpop.permute.xlu0 %1108 }
 0x57e   : > { %v1111_v38 = vmul.f32 %v1644_v36, %v1109_v37 }
 0x580   : > { %1645 = vtanh.f32 %v1111_v38 }
 0x58a   : > { %v1646_v41 = vpop.eup %1645 }
 0x58b   : > { %1114 = vrot.lane.b32.xlu1 %v1646_v41, %s1697_s27 }
 0x5fd   : > { %v1115_v42 = vpop.permute.xlu1 %1114 }
 0x5fe   : > { %v1117_v43 = vmul.f32 %v1644_v36, %v1115_v42 }
 0x600   : > { %v1118_v44 = vpack.c.bf16 %v1117_v43, %v1117_v43 }
 0x602   : > { %1131 = vrot.lane.b32.xlu0 %v1118_v44, %s1698_s28 }
 0x674   : > { %v1132_v3 = vpop.permute.xlu0 %1131 }
 0x675   : > { %1506 = vmatmul.mubr.msk.bf16.vlgmr.msra.gmra.mrb[12].mxu1 %vm1056_vm0, %v1132_v3 }
 0x748   : > { %v1182_v47 = vpop.f32.mrb[12].mxu1 }
 0x749   : > { %v1183_v45 = vadd.f32 %v1328_v31, %v1182_v47  ;;  %v1507_v46 = vpop.f32.mrb[13].mxu1 }
 0x74a   : > { %v1185_v48 = vpop.f32.mrb[14].mxu1 }
 0x74b   : > { %1188 = vst [vmem:[%s374_s22] sm:$0xff] %v1183_v45  ;;  %v1508_v49 = vpop.f32.mrb[15].mxu1 }
 0x74c PF: > { %s21_s13 = sadd.s32 1, %s1685_s13  }
 0x74d   : > { %p18_p5 = scmp.ge.s32.totalorder %s21_s13, 4  }
 0x74f   :  { %20 = sbr.rel (!%p18_p5) target bundleno = 1 (0x1), region = 95 }
 0x756   :  { %1208 = vsyncpa [#allocation3], 1 }
 0x757   :  { %1210 = vsyncpa [#allocation3 + $0x1], 1 }

// kernel: forward.1
= control target key start
LH: loop header
LB: loop body
LE: loop exit
PB: predicated region body
PF: predicated region fallthrough
CT: control target
= control target key end

     0   :  { %15 = vsyncpa [#allocation3], 0  ;;  %s1754_s13 = smov 0   ;;  %s2009_s0 = inlined_call_operand.vmem [shape: s32[128,3], index: 0, kind: input, shape index: {}]   ;;  %s2010_s1 = inlined_call_operand.hbm [shape: f32[384,128], index: 1, kind: input, shape index: {}]   ;;  %s2011_s2 = inlined_call_operand.vmem [shape: f32[1,128], index: 2, kind: input, shape index: {}]   ;;  %s2012_s3 = inlined_call_operand.vmem [shape: f32[8,128], index: 3, kind: input, shape index: {}]   ;;  %s2013_s4 = inlined_call_operand.vmem [shape: bf16[128,128], index: 4, kind: input, shape index: {}]   ;;  %s2014_s5 = inlined_call_operand.vmem [shape: f32[1,128], index: 5, kind: input, shape index: {}]   ;;  %s2015_s6 = inlined_call_operand.vmem [shape: bf16[32,128], index: 6, kind: input, shape index: {}]   ;;  %s2016_s7 = inlined_call_operand.vmem [shape: f32[1,128], index: 7, kind: input, shape index: {}]   ;;  %s2017_s8 = inlined_call_operand.vmem [shape: bf16[32,128], index: 8, kind: input, shape index: {}]   ;;  %s2018_s9 = inlined_call_operand.vmem [shape: f32[1,128], index: 9, kind: input, shape index: {}]   ;;  %s2019_s10 = inlined_call_operand.vmem [shape: f32[16,128], index: 10, kind: output, shape index: {}]  }
   0x1 LB: > { %s1760_s14 = sadd.s32 4294967295, %s1685_s13   ;;  %p1256_p0 = scmp.ge.s32.totalorder %s1685_s13, 1  ;;  %s1685_s13 = sphi %s1754_s13, %s21_s13  }
   0x2   : > { %p267_p1 = scmp.lt.s32.totalorder %s1685_s13, 3  ;;  %s1687_s15 = smov [#allocation2]  }
   0x3   : > { %s279_s16 = sshll.u32 %s1687_s15, 4  ;;  %p2020_p3 = scmp.eq.s32.totalorder %s1760_s14, 0  ;;  %s280_s16 = int_to_ptr.vmem [resolvable:$true] %s279_s16 }
   0x4   : > { %p1764_p2 = pnand %p1256_p0, %p267_p1  ;;  %s1647_s21 = scalar_lea.hbm %s2010_s1, 6144 }
   0x5   : > { %p1648_p6 = scmp.ne.s32.totalorder %s2010_s1, %s1647_s21  ;;  %p1654_p10 = scmp.lt.u32.totalorder %s1647_s21, %s2010_s1 }
   0x6   : > { %s2022_s17 = scalar_select %p1764_p2, 1, 0 }
   0x7   : > { %p1577_p4 = pneg %p1764_p2 }
   0x9   : > { %p1773_p5 = pnand %p2020_p3, %p1577_p4 }
   0xb   : > { %p1649_p7 = pneg %p1773_p5 }
   0xd   : > { %p1650_p8 = pnand %p1649_p7, %p1648_p6 }
   0xf   : > { %p1651_p9 = pneg %p1650_p8 }
  0x11   : > { %p1656_p11 = pnand %p1654_p10, %p1651_p9 }
  0x13   : > { %1659 = shalt.err (!%p1656_p11)
}
  0x14   : > { %s1660_s26 = scalar_lea.vmem %s280_s16, 6144  ;;  %p1668_p1 = scmp.lt.s32.totalorder %s280_s16, %s280_s16 }
  0x15   : > { %p1661_p12 = scmp.ne.s32.totalorder %s280_s16, %s1660_s26  ;;  %p1669_p4 = scmp.lt.s32.totalorder %s1660_s26, %s1660_s26 }
  0x17   : > { %p1663_p13 = pnand %p1661_p12, %p1649_p7  ;;  %p1670_p3 = por %p1669_p4, %p1668_p1 }
  0x19   : > { %p1664_p0 = pneg %p1663_p13 }
  0x1b   : > { %p1671_p2 = pnand %p1670_p3, %p1664_p0 }
  0x1d   : > { %1674 = shalt.err (!%p1671_p2)
}
  0x1e   : > { %s1688_s27 = smov 128   ;;  %s1689_s28 = smov 8  }
  0x1f   : > { %1580 = dma.hbm_to_vmem [thread:$0]  (!%p1773_p5), %s2010_s1, 6144, %s280_s16, [#allocation3], %s1688_s27, %s1688_s27, %s1689_s28  }
  0x20   : > { %p2024_p6 = scmp.ne.s32.totalorder %s2022_s17, 0 }
  0x21   : > { %p2025_p8 = scmp.eq.s32.totalorder (!%p2024_p6), %s1760_s14, 0 }
  0x22   : > { %328 = sbr.rel (%p2024_p6) target bundleno = 1868 (0x74c), region = 60 }
  0x29   : > { %1680 = dma.done.wait (%p2025_p8), [#allocation3], 6144   ;;  %p2026_p7 = pmov %p2025_p8 }
  0x2a   : > { %s1261_s11 = sshll.u32 %s1760_s14, 3  ;;  %v1690_v0 = vmov 1   ;;  %v546_v3 = vld [vmem:[#allocation2 + $0x80] sm:$0xff]  ;;  %v547_v4 = vld [vmem:[#allocation2 + $0x88] sm:$0xff]  ;;  %v548_v9 = vld [vmem:[#allocation2 + $0x90] sm:$0xff]  ;;  %v1691_v11 = vmov 0  }
  0x2b   : > { %1682 = vsyncadd (%p2026_p7), [#allocation3], 4294961152  ;;  %1605 = vset.pattern.permute.xlu1 %v1690_v0  ;;  %1603 = vset.pattern.permute.xlu0 %v1690_v0  ;;  %p366_p2 = scmp.lt.s32.totalorder %s1261_s11, 15  ;;  %v530_v5 = vld [vmem:[#allocation2] sm:$0xff]  ;;  %v531_v6 = vld [vmem:[#allocation2 + $0x8] sm:$0xff]  ;;  %v1509_v7 = vpack.c.bf16 %v547_v4, %v546_v3  ;;  %v1692_v38 = vmov 2  }
  0x2c   : > { %v1511_v8 = vpack.c.bf16 %v531_v6, %v530_v5  ;;  %v549_v10 = vld [vmem:[#allocation2 + $0x98] sm:$0xff]  ;;  %v532_v13 = vld [vmem:[#allocation2 + $0x10] sm:$0xff]  ;;  %v550_v15 = vld [vmem:[#allocation2 + $0xa0] sm:$0xff]  ;;  %s1696_s22 = smov 64   ;;  %s1697_s27 = smov 32  }
  0x2d   : > { %s2028_s11 = smov (!%p366_p2, %s1261_s11), 15  ;;  %v1513_v12 = vpack.c.bf16 %v549_v10, %v548_v9  ;;  %v533_v14 = vld [vmem:[#allocation2 + $0x18] sm:$0xff]  ;;  %v551_v16 = vld [vmem:[#allocation2 + $0xa8] sm:$0xff]  ;;  %1510 = vmatprep.subr.bf16.mxu0 %v1509_v7  ;;  %v534_v21 = vld [vmem:[#allocation2 + $0x20] sm:$0xff]  ;;  %s1698_s28 = smov 96  }
  0x2e   : > { %s1262_s12 = sshll.u32 %s2028_s11, 3  ;;  %1512 = vmatpush3.bf16.msra.mxu0 %v1511_v8  ;;  %v1515_v19 = vpack.c.bf16 %v533_v14, %v532_v13  ;;  %v1517_v20 = vpack.c.bf16 %v551_v16, %v550_v15  ;;  %v535_v22 = vld [vmem:[#allocation2 + $0x28] sm:$0xff]  ;;  %v552_v23 = vld [vmem:[#allocation2 + $0xb0] sm:$0xff]  ;;  %v553_v24 = vld [vmem:[#allocation2 + $0xb8] sm:$0xff]  ;;  %p371_p3 = scmp.lt.s32.totalorder %s1760_s14, 1 }
  0x2f   : > { %s1805_s17 = scalar_lea.vmem %s2009_s0, %s1262_s12  ;;  %1514 = vmatprep.subr.bf16.mxu0 %v1513_v12  ;;  %v562_v25 = vld [vmem:[#allocation2 + $0x100] sm:$0xff]  ;;  %v563_v26 = vld [vmem:[#allocation2 + $0x108] sm:$0xff]  ;;  %v1519_v28 = vpack.c.bf16 %v535_v22, %v534_v21  ;;  %v564_v30 = vld [vmem:[#allocation2 + $0x110] sm:$0xff]  ;;  %v1521_v31 = vpack.c.bf16 %v553_v24, %v552_v23 }
  0x30   : > { %v1808_v1 = vld [vmem:[%s1805_s17 + $0x8] sm:$0xff]  ;;  %v1811_v2 = vld [vmem:[%s1805_s17] sm:$0xff]  ;;  %v378_v17 = vld [vmem:[%s1805_s17 + $0x10] sm:$0xff]  ;;  %v1541_v29 = vpack.c.bf16 %v563_v26, %v562_v25  ;;  %v1693_v25 = vmov 1.0   ;;  %s2030_s14 = smov (!%p371_p3, %s1760_s14), 1 }
  0x31   : > { %438 = vperm.xlu1 %1605, %v1808_v1   ;;  %435 = vperm.xlu0 %1603, %v1811_v2   ;;  %v1821_v18 = vld [vmem:[%s1805_s17 + $0x28] sm:$0xff]  ;;  %v1827_v27 = vld [vmem:[%s1805_s17 + $0x18] sm:$0xff]  ;;  %v536_v32 = vld [vmem:[#allocation2 + $0x30] sm:$0xff] }
  0x32   : > { %1516 = vmatpush3.bf16.msra.mxu0 %v1515_v19  ;;  %v537_v33 = vld [vmem:[#allocation2 + $0x38] sm:$0xff]  ;;  %v554_v35 = vld [vmem:[#allocation2 + $0xc0] sm:$0xff]  ;;  %v555_v36 = vld [vmem:[#allocation2 + $0xc8] sm:$0xff]  ;;  %1542 = vmatprep.subr.bf16.mxu1 %v1541_v29 }
  0x33   : > { %1518 = vmatprep.subr.bf16.mxu0 %v1517_v20  ;;  %v565_v34 = vld [vmem:[#allocation2 + $0x118] sm:$0xff]  ;;  %v1832_v39 = vld [vmem:[%s1805_s17 + $0x20] sm:$0xff]  ;;  %v539_v41 = vld [vmem:[#allocation2 + $0x48] sm:$0xff]  ;;  %v1523_v42 = vpack.c.bf16 %v537_v33, %v536_v32  ;;  %v1525_v46 = vpack.c.bf16 %v555_v36, %v554_v35  ;;  %1544 = vmatpush3.bf16.msra.mxu1 %v1541_v29 }
  0x34   : > { %v1545_v37 = vpack.c.bf16 %v565_v34, %v564_v30  ;;  %v538_v40 = vld [vmem:[#allocation2 + $0x40] sm:$0xff]  ;;  %v556_v43 = vld [vmem:[#allocation2 + $0xd0] sm:$0xff]  ;;  %v567_v45 = vld [vmem:[#allocation2 + $0x128] sm:$0xff] }
  0x35   : > { %1606 = vset.pattern.permute.xlu1 %v1691_v11  ;;  %1604 = vset.pattern.permute.xlu0 %v1691_v11  ;;  %v566_v44 = vld [vmem:[#allocation2 + $0x120] sm:$0xff]  ;;  %v557_v47 = vld [vmem:[#allocation2 + $0xd8] sm:$0xff]  ;;  %v568_v48 = vld [vmem:[#allocation2 + $0x130] sm:$0xff]  ;;  %v1527_v53 = vpack.c.bf16 %v539_v41, %v538_v40 }
  0x36   : > { %390 = vperm.xlu1 %1606, %v1808_v1   ;;  %387 = vperm.xlu0 %1604, %v1811_v2   ;;  %v569_v49 = vld [vmem:[#allocation2 + $0x138] sm:$0xff]  ;;  %v540_v50 = vld [vmem:[#allocation2 + $0x50] sm:$0xff]  ;;  %v1549_v52 = vpack.c.bf16 %v567_v45, %v566_v44  ;;  %v558_v54 = vld [vmem:[#allocation2 + $0xe0] sm:$0xff]  ;;  %v1529_v56 = vpack.c.bf16 %v557_v47, %v556_v43  ;;  %v1694_v47 = vmov 0.0  }
  0x37   : > { %1520 = vmatpush3.bf16.msra.mxu0 %v1519_v28  ;;  %1546 = vmatprep.subr.bf16.mxu1 %v1545_v37  ;;  %v541_v51 = vld [vmem:[#allocation2 + $0x58] sm:$0xff]  ;;  %v559_v55 = vld [vmem:[#allocation2 + $0xe8] sm:$0xff]  ;;  %v570_v57 = vld [vmem:[#allocation2 + $0x140] sm:$0xff]  ;;  %v1553_v61 = vpack.c.bf16 %v569_v49, %v568_v48 }
  0x38   : > { %1522 = vmatprep.subr.bf16.mxu0 %v1521_v31  ;;  %1548 = vmatpush3.bf16.msra.mxu1 %v1545_v37  ;;  %v571_v58 = vld [vmem:[#allocation2 + $0x148] sm:$0xff]  ;;  %v542_v59 = vld [vmem:[#allocation2 + $0x60] sm:$0xff]  ;;  %v1531_v62 = vpack.c.bf16 %v541_v51, %v540_v50  ;;  %v1533_v63 = vpack.c.bf16 %v559_v55, %v558_v54  ;;  %v560_v3 = vld [vmem:[#allocation2 + $0xf0] sm:$0xff] }
  0x39   : > { %v543_v60 = vld [vmem:[#allocation2 + $0x68] sm:$0xff]  ;;  %1550 = vmatprep.subr.bf16.mxu1 %v1549_v52  ;;  %v561_v4 = vld [vmem:[#allocation2 + $0xf8] sm:$0xff]  ;;  %v1557_v5 = vpack.c.bf16 %v571_v58, %v570_v57  ;;  %v572_v7 = vld [vmem:[#allocation2 + $0x150] sm:$0xff] }
  0x3a   : > { %1607 = vset.pattern.permute.xlu1 %v1690_v0  ;;  %1609 = vset.pattern.permute.xlu0 %v1690_v0  ;;  %v1535_v6 = vpack.c.bf16 %v543_v60, %v542_v59  ;;  %v573_v8 = vld [vmem:[#allocation2 + $0x158] sm:$0xff]  ;;  %v382_v10 = vld [vmem:[%s1805_s17 + $0x30] sm:$0xff]  ;;  %v1537_v12 = vpack.c.bf16 %v561_v4, %v560_v3  ;;  %v575_v15 = vld [vmem:[#allocation2 + $0x168] sm:$0xff] }
  0x3b   : > { %441 = vperm.xlu1 %1607, %v378_v17   ;;  %450 = vperm.xlu0 %1609, %v1821_v18   ;;  %v545_v9 = vld [vmem:[#allocation2 + $0x78] sm:$0xff]  ;;  %v1561_v13 = vpack.c.bf16 %v573_v8, %v572_v7  ;;  %v1620_v48 = vld [vmem:[%s2013_s4 + $0x8] sm:$0xff]   ;;  %v1621_v49 = vld [vmem:[%s2013_s4 + $0x10] sm:$0xff]  }
  0x3c   : > { %1524 = vmatpush3.bf16.msra.mxu0 %v1523_v42  ;;  %1552 = vmatpush3.bf16.msra.mxu1 %v1549_v52  ;;  %v577_v19 = vld [vmem:[#allocation2 + $0x178] sm:$0xff]  ;;  %v1623_v51 = vld [vmem:[%s2013_s4 + $0x20] sm:$0xff]   ;;  %v1624_v52 = vld [vmem:[%s2013_s4 + $0x28] sm:$0xff]  }
  0x3d   : > { %1526 = vmatprep.subr.bf16.mxu0 %v1525_v46  ;;  %1554 = vmatprep.subr.bf16.mxu1 %v1553_v61  ;;  %v383_v21 = vld [vmem:[%s1805_s17 + $0x38] sm:$0xff]  ;;  %v1619_v46 = vld [vmem:[%s2013_s4] sm:$0xff]   ;;  %s1263_s17 = sshll.u32 %s2030_s14, 3 }
  0x3e   : > { %v1622_v50 = vld [vmem:[%s2013_s4 + $0x18] sm:$0xff]   ;;  %v1944_v3 = vld [vmem:[%s2011_s2] ss:$0 sm:$0xff] }
  0x3f   : > { %444 = vperm.xlu1 %1607, %v1827_v27   ;;  %1611 = vset.pattern.permute.xlu0 %v1692_v38  ;;  %v1626_v54 = vld [vmem:[%s2013_s4 + $0x38] sm:$0xff]  }
  0x40   : > { %489 = vperm.xlu0 %1611, %v378_v17   ;;  %1528 = vmatpush3.bf16.msra.mxu0 %v1527_v53  ;;  %v1625_v53 = vld [vmem:[%s2013_s4 + $0x30] sm:$0xff]  }
  0x41   : > { %1530 = vmatprep.subr.bf16.mxu0 %v1529_v56  ;;  %1556 = vmatpush3.bf16.msra.mxu1 %v1553_v61 }
  0x42   : > { %1558 = vmatprep.subr.bf16.mxu1 %v1557_v5 }
  0x43   : > { %447 = vperm.xlu1 %1607, %v1832_v39  }
  0x44   : > { %1612 = vset.pattern.permute.xlu0 %v1691_v11  ;;  %1532 = vmatpush3.bf16.msra.mxu0 %v1531_v62 }
  0x45   : > { %393 = vperm.xlu0 %1612, %v378_v17   ;;  %1534 = vmatprep.subr.bf16.mxu0 %v1533_v63  ;;  %v576_v17 = vld [vmem:[#allocation2 + $0x170] sm:$0xff] }
  0x46   : > { %1560 = vmatpush3.bf16.msra.mxu1 %v1557_v5  ;;  %v1569_v20 = vpack.c.bf16 %v577_v19, %v576_v17 }
  0x47   : > { %1608 = vset.pattern.permute.xlu1 %v1692_v38  ;;  %1562 = vmatprep.subr.bf16.mxu1 %v1561_v13 }
  0x48   : > { %483 = vperm.xlu1 %1608, %v1811_v2   ;;  %v544_v2 = vld [vmem:[#allocation2 + $0x70] sm:$0xff]  ;;  %1536 = vmatpush3.bf16.msra.mxu0 %v1535_v6 }
  0x49   : > { %396 = vperm.xlu0 %1612, %v1827_v27   ;;  %v1539_v14 = vpack.c.bf16 %v545_v9, %v544_v2  ;;  %1538 = vmatprep.subr.bf16.mxu0 %v1537_v12 }
  0x4a   : > { %1564 = vmatpush3.bf16.msra.mxu1 %v1561_v13  ;;  %v1951_v13 = vld [vmem:[%s2012_s3] sm:$0xff] }
  0x4c   : > { %486 = vperm.xlu1 %1608, %v1808_v1   ;;  %v574_v1 = vld [vmem:[#allocation2 + $0x160] sm:$0xff]  ;;  %1540 = vmatpush3.bf16.msra.mxu0 %v1539_v14 }
  0x4d   : > { %399 = vperm.xlu0 %1612, %v1832_v39   ;;  %v1565_v16 = vpack.c.bf16 %v575_v15, %v574_v1  ;;  %1473 = vmatprep.subr.bf16.mxu0 %v1694_v47 }
  0x4f   : > { %1566 = vmatprep.subr.bf16.mxu1 %v1565_v16 }
  0x50   : > { %1610 = vset.pattern.permute.xlu1 %v1691_v11  ;;  %1568 = vmatpush3.bf16.msra.mxu1 %v1565_v16 }
  0x51   : > { %402 = vperm.xlu1 %1610, %v1821_v18   ;;  %405 = vperm.xlu0 %1612, %v382_v10  }
  0x52   : > { %1570 = vmatprep.subr.bf16.mxu1 %v1569_v20 }
  0x54   : > { %1572 = vmatpush3.bf16.msra.mxu1 %v1569_v20 }
  0x55   : > { %1613 = vset.pattern.permute.xlu1 %v1690_v0  ;;  %1616 = vset.pattern.permute.xlu0 %v1692_v38 }
  0x56   : > { %453 = vperm.xlu1 %1613, %v382_v10   ;;  %498 = vperm.xlu0 %1616, %v1821_v18   ;;  %v384_v18 = vlaneseq }
  0x57   : > { %1493 = vmatprep.subr.bf16.mxu1 %v1694_v47 }
  0x58   : > { %v1854_v22 = vand.u32 127, %v384_v18 }
  0x5a   : > { %1614 = vset.pattern.permute.xlu1 %v1692_v38  ;;  %504 = vperm.xlu0 %1616, %v383_v21  }
  0x5b   : > { %492 = vperm.xlu1 %1614, %v1827_v27  }
  0x5f   : > { %495 = vperm.xlu1 %1614, %v1832_v39  }
  0x63   : > { %1615 = vset.pattern.permute.xlu1 %v1690_v0 }
  0x64   : > { %456 = vperm.xlu1 %1615, %v383_v21  }
  0x68   : > { %1617 = vset.pattern.permute.xlu1 %v1691_v11 }
  0x69   : > { %408 = vperm.xlu1 %1617, %v383_v21  }
  0x6d   : > { %1618 = vset.pattern.permute.xlu1 %v1692_v38 }
  0x6e   : > { %501 = vperm.xlu1 %1618, %v382_v10  }
  0xb0   : > { %v439_v23 = vpop.permute.xlu1 %438  ;;  %v436_v24 = vpop.permute.xlu0 %435 }
  0xb1   : > { %vm458_vm0 = vcmp.eq.s32.totalorder %v1854_v22, %v436_v24  ;;  %vm459_vm2 = vcmp.eq.s32.totalorder %v1854_v22, %v439_v23 }
  0xb2   : > { %1289 = vmatprep.mubr.msk.f32.mxu0 %vm458_vm0, %v1693_v25 }
  0xb5   : > { %v391_v26 = vpop.permute.xlu1 %390  ;;  %v388_v27 = vpop.permute.xlu0 %387 }
  0xb6   : > { %vm410_vm1 = vcmp.eq.s32.totalorder %v1854_v22, %v388_v27  ;;  %vm411_vm3 = vcmp.eq.s32.totalorder %v1854_v22, %v391_v26 }
  0xb7   : > { %1290 = vmatmul.mubr.msk.f32.vlgmr.msra.gmra.mrb[0].mxu0 %vm410_vm1, %v1693_v25 }
  0xb8   : > { %1291 = vmatprep.mubr.msk.f32.mxu0 %vm459_vm2, %v1693_v25  ;;  %1474 = vmatpush3.bf16.msra.mxu0 %v1619_v46 }
  0xb9   : > { %1475 = vmatprep.subr.bf16.mxu0 %v1694_v47 }
  0xba   : > { %v442_v0 = vpop.permute.xlu1 %441  ;;  %v451_v11 = vpop.permute.xlu0 %450 }
  0xbb   : > { %vm460_vm4 = vcmp.eq.s32.totalorder %v1854_v22, %v442_v0  ;;  %1292 = vmatmul.mubr.msk.f32.gmra.mrb[2].mxu0 %vm411_vm3, %v1693_v25  ;;  %vm463_vm11 = vcmp.eq.s32.totalorder %v1854_v22, %v451_v11 }
  0xbc   : > { %1293 = vmatprep.mubr.msk.f32.mxu0 %vm460_vm4, %v1693_v25  ;;  %1476 = vmatpush3.bf16.msra.mxu0 %v1620_v48 }
  0xbd   : > { %1477 = vmatprep.subr.bf16.mxu0 %v1694_v47 }
  0xbe   : > { %v445_v28 = vpop.permute.xlu1 %444 }
  0xbf   : > { %v490_v29 = vpop.permute.xlu0 %489  ;;  %vm461_vm6 = vcmp.eq.s32.totalorder %v1854_v22, %v445_v28 }
  0xc0   : > { %vm508_vm10 = vcmp.eq.s32.totalorder %v1854_v22, %v490_v29  ;;  %1478 = vmatpush3.bf16.msra.mxu0 %v1621_v49 }
  0xc1   : > { %1479 = vmatprep.subr.bf16.mxu0 %v1694_v47 }
  0xc2   : > { %v448_v30 = vpop.permute.xlu1 %447 }
  0xc3   : > { %vm462_vm9 = vcmp.eq.s32.totalorder %v1854_v22, %v448_v30 }
  0xc4   : > { %v394_v31 = vpop.permute.xlu0 %393  ;;  %1480 = vmatpush3.bf16.msra.mxu0 %v1622_v50 }
  0xc5   : > { %vm412_vm5 = vcmp.eq.s32.totalorder %v1854_v22, %v394_v31  ;;  %1481 = vmatprep.subr.bf16.mxu0 %v1694_v47 }
  0xc6   : > { %1294 = vmatmul.mubr.msk.f32.gmra.mrb[4].mxu0 %vm412_vm5, %v1693_v25 }
  0xc7   : > { %v484_v32 = vpop.permute.xlu1 %483  ;;  %1295 = vmatprep.mubr.msk.f32.mxu0 %vm461_vm6, %v1693_v25 }
  0xc8   : > { %v397_v33 = vpop.permute.xlu0 %396  ;;  %vm506_vm7 = vcmp.eq.s32.totalorder %v1854_v22, %v484_v32  ;;  %1482 = vmatpush3.bf16.msra.mxu0 %v1623_v51 }
  0xc9   : > { %vm413_vm8 = vcmp.eq.s32.totalorder %v1854_v22, %v397_v33  ;;  %1461 = vmatprep.mubr.msk.f32.mxu1 %vm506_vm7, %v1693_v25  ;;  %1483 = vmatprep.subr.bf16.mxu0 %v1694_v47 }
  0xca   : > { %1296 = vmatmul.mubr.msk.f32.gmra.mrb[6].mxu0 %vm413_vm8, %v1693_v25  ;;  %vm1695_vm8 = vmmov 0  }
  0xcb   : > { %v487_v34 = vpop.permute.xlu1 %486  ;;  %1297 = vmatprep.mubr.msk.f32.mxu0 %vm462_vm9, %v1693_v25  ;;  %vm907_vm9 = vcmask 1041409  }
  0xcc   : > { %vm507_vm12 = vcmp.eq.s32.totalorder %v1854_v22, %v487_v34  ;;  %v400_v35 = vpop.permute.xlu0 %399  ;;  %1484 = vmatpush3.bf16.msra.mxu0 %v1624_v52 }
  0xcd   : > { %vm414_vm13 = vcmp.eq.s32.totalorder %v1854_v22, %v400_v35  ;;  %1462 = vmatmul.mubr.msk.f32.vlgmr.msra.gmra.mrb[0].mxu1 %vm507_vm12, %v1693_v25  ;;  %1485 = vmatprep.subr.bf16.mxu0 %v1694_v47  ;;  %vm913_vm12 = vcmask 1044484  }
  0xce   : > { %1298 = vmatmul.mubr.msk.f32.gmra.mrb[8].mxu0 %vm414_vm13, %v1693_v25  ;;  %1464 = vmatprep.mubr.msk.f32.mxu1 %vm508_vm10, %v1693_v25  ;;  %vm909_vm10 = vcmask 1042434   ;;  %vm915_vm13 = vcmask 1045509  }
  0xcf   : > { %1299 = vmatprep.mubr.msk.f32.mxu0 %vm463_vm11, %v1693_v25  ;;  %vm911_vm11 = vcmask 1043459  }
  0xd0   : > { %v403_v36 = vpop.permute.xlu1 %402  ;;  %v406_v37 = vpop.permute.xlu0 %405  ;;  %1486 = vmatpush3.bf16.msra.mxu0 %v1625_v53 }
  0xd1   : > { %vm415_vm14 = vcmp.eq.s32.totalorder %v1854_v22, %v403_v36  ;;  %vm416_vm15 = vcmp.eq.s32.totalorder %v1854_v22, %v406_v37  ;;  %1487 = vmatprep.subr.bf16.mxu0 %v1694_v47 }
  0xd2   : > { %1300 = vmatmul.mubr.msk.f32.gmra.mrb[10].mxu0 %vm415_vm14, %v1693_v25  ;;  %vm917_vm14 = vcmask 1046534  }
  0xd4   : > { %1488 = vmatpush3.bf16.msra.mxu0 %v1626_v54 }
  0xd5   : > { %v454_v38 = vpop.permute.xlu1 %453  ;;  %v499_v40 = vpop.permute.xlu0 %498 }
  0xd6   : > { %vm464_vm0 = vcmp.eq.s32.totalorder %v1854_v22, %v454_v38  ;;  %vm511_vm2 = vcmp.eq.s32.totalorder %v1854_v22, %v499_v40 }
  0xd7   : > { %1301 = vmatprep.mubr.msk.f32.mxu0 %vm464_vm0, %v1693_v25  ;;  %vm1056_vm0 = vcmask 261120  }
  0xd8   : > { %1302 = vmatmul.mubr.msk.f32.gmra.mrb[12].mxu0 %vm416_vm15, %v1693_v25  ;;  %vm919_vm15 = vcmask 1047559  }
  0xd9   : > { %v505_v44 = vpop.permute.xlu0 %504 }
  0xda   : > { %v493_v39 = vpop.permute.xlu1 %492  ;;  %vm513_vm7 = vcmp.eq.s32.totalorder %v1854_v22, %v505_v44 }
  0xdb   : > { %vm509_vm1 = vcmp.eq.s32.totalorder %v1854_v22, %v493_v39 }
  0xdc   : > { %1465 = vmatmul.mubr.msk.f32.gmra.mrb[2].mxu1 %vm509_vm1, %v1693_v25 }
  0xde   : > { %v496_v41 = vpop.permute.xlu1 %495 }
  0xdf   : > { %vm510_vm3 = vcmp.eq.s32.totalorder %v1854_v22, %v496_v41 }
  0xe0   : > { %1467 = vmatprep.mubr.msk.f32.mxu1 %vm510_vm3, %v1693_v25 }
  0xe1   : > { %1468 = vmatmul.mubr.msk.f32.gmra.mrb[4].mxu1 %vm511_vm2, %v1693_v25 }
  0xe3   : > { %v457_v42 = vpop.permute.xlu1 %456 }
  0xe4   : > { %vm465_vm4 = vcmp.eq.s32.totalorder %v1854_v22, %v457_v42 }
  0xe5   : > { %1303 = vmatprep.mubr.msk.f32.mxu0 %vm465_vm4, %v1693_v25 }
  0xe8   : > { %v409_v43 = vpop.permute.xlu1 %408 }
  0xe9   : > { %vm417_vm5 = vcmp.eq.s32.totalorder %v1854_v22, %v409_v43 }
  0xea   : > { %1304 = vmatmul.mubr.msk.f32.gmra.mrb[14].mxu0 %vm417_vm5, %v1693_v25 }
  0xeb   : > { %1489 = vmatprep.mubr.msk.bf16.mxu0 %vm1695_vm8, %v1694_v47 }
  0xed   : > { %v502_v45 = vpop.permute.xlu1 %501 }
  0xee   : > { %vm512_vm6 = vcmp.eq.s32.totalorder %v1854_v22, %v502_v45 }
  0xef   : > { %1470 = vmatprep.mubr.msk.f32.mxu1 %vm512_vm6, %v1693_v25 }
  0xf0   : > { %1471 = vmatmul.mubr.msk.f32.gmra.mrb[6].mxu1 %vm513_vm7, %v1693_v25 }
  0xf1   : > { %1497 = vmatprep.mubr.msk.bf16.mxu1 %vm1695_vm8, %v1694_v47 }
 0x18a   : > { %v1366_v55 = vpop.f32.mrb[0].mxu0 }
 0x18b   : > { %v1367_v56 = vpop.f32.mrb[1].mxu0 }
 0x18c   : > { %v1368_v57 = vadd.f32 %v1367_v56, %v1366_v55 }
 0x18e   : > { %v1369_v58 = vpop.f32.mrb[2].mxu0  ;;  %v652_v5 = vadd.f32 %v1368_v57, %v1944_v3 }
 0x18f   : > { %v1370_v59 = vpop.f32.mrb[3].mxu0 }
 0x190   : > { %v1371_v60 = vadd.f32 %v1370_v59, %v1369_v58 }
 0x192   : > { %v657_v7 = vadd.f32 %v1371_v60, %v1944_v3 }
 0x199   : > { %v1372_v61 = vpop.f32.mrb[4].mxu0 }
 0x19a   : > { %v1373_v62 = vpop.f32.mrb[5].mxu0 }
 0x19b   : > { %v1374_v63 = vadd.f32 %v1373_v62, %v1372_v61 }
 0x19d   : > { %v1375_v4 = vpop.f32.mrb[6].mxu0  ;;  %v662_v32 = vadd.f32 %v1374_v63, %v1944_v3 }
 0x19e   : > { %v1376_v6 = vpop.f32.mrb[7].mxu0 }
 0x19f   : > { %v1377_v8 = vadd.f32 %v1376_v6, %v1375_v4 }
 0x1a0   : > { %v1463_v2 = vpop.f32.mrb[0].mxu1 }
 0x1a1   : > { %v762_v9 = vadd.f32 %v1463_v2, %v657_v7  ;;  %v756_v10 = vpop.f32.mrb[1].mxu1  ;;  %v1378_v12 = vpop.f32.mrb[8].mxu0  ;;  %v667_v29 = vadd.f32 %v1377_v8, %v1944_v3 }
 0x1a2   : > { %v757_v14 = vadd.f32 %v756_v10, %v652_v5  ;;  %v1379_v1 = vpop.f32.mrb[9].mxu0 }
 0x1a3   : > { %v796_v15 = vmax.f32 %v762_v9, 0.0  ;;  %v1380_v16 = vadd.f32 %v1379_v1, %v1378_v12 }
 0x1a4   : > { %v795_v17 = vmax.f32 %v757_v14, 0.0 }
 0x1a5   : > { %v805_v19 = vmul.f32 %v1951_v13, %v796_v15  ;;  %v1381_v20 = vpop.f32.mrb[10].mxu0  ;;  %v672_v50 = vadd.f32 %v1380_v16, %v1944_v3 }
 0x1a6   : > { %v804_v21 = vmul.f32 %v1951_v13, %v795_v17  ;;  %v1382_v18 = vpop.f32.mrb[11].mxu0 }
 0x1a7   : > { %v818_v22 = vrot.slane %v805_v19, 4  ;;  %v1383_v23 = vadd.f32 %v1382_v18, %v1381_v20 }
 0x1a8   : > { %v812_v24 = vrot.slane %v804_v21, 4 }
 0x1a9   : > { %v819_v25 = vmax.f32 %v805_v19, %v818_v22  ;;  %v677_v45 = vadd.f32 %v1383_v23, %v1944_v3 }
 0x1aa   : > { %v813_v26 = vmax.f32 %v804_v21, %v812_v24 }
 0x1ab   : > { %v820_v27 = vrot.slane %v819_v25, 2  ;;  %v1384_v0 = vpop.f32.mrb[12].mxu0 }
 0x1ac   : > { %v814_v11 = vrot.slane %v813_v26, 2  ;;  %v1385_v28 = vpop.f32.mrb[13].mxu0 }
 0x1ad   : > { %v821_v30 = vmax.f32 %v819_v25, %v820_v27  ;;  %v1386_v31 = vadd.f32 %v1385_v28, %v1384_v0 }
 0x1ae   : > { %v815_v33 = vmax.f32 %v813_v26, %v814_v11 }
 0x1af   : > { %v822_v34 = vrot.slane %v821_v30, 1  ;;  %v1466_v35 = vpop.f32.mrb[2].mxu1  ;;  %v682_v28 = vadd.f32 %v1386_v31, %v1944_v3 }
 0x1b0   : > { %v816_v36 = vrot.slane %v815_v33, 1  ;;  %v772_v37 = vadd.f32 %v1466_v35, %v667_v29  ;;  %v766_v38 = vpop.f32.mrb[3].mxu1 }
 0x1b1   : > { %v823_v39 = vmax.f32 %v821_v30, %v822_v34  ;;  %v767_v40 = vadd.f32 %v766_v38, %v662_v32 }
 0x1b2   : > { %v817_v41 = vmax.f32 %v815_v33, %v816_v36  ;;  %v798_v42 = vmax.f32 %v772_v37, 0.0 }
 0x1b3   : > { %v861_v43 = vpack.c.bf16 %v823_v39, %v823_v39  ;;  %v797_v44 = vmax.f32 %v767_v40, 0.0 }
 0x1b4   : > { %v860_v46 = vpack.c.bf16 %v817_v41, %v817_v41  ;;  %v807_v48 = vmul.f32 %v1951_v13, %v798_v42  ;;  %v1469_v49 = vpop.f32.mrb[4].mxu1 }
 0x1b5   : > { %v900_v51 = vunpack.c.l.b16 %v861_v43  ;;  %v806_v52 = vmul.f32 %v1951_v13, %v797_v44  ;;  %v782_v53 = vadd.f32 %v1469_v49, %v677_v45  ;;  %v776_v54 = vpop.f32.mrb[5].mxu1 }
 0x1b6   : > { %v899_v55 = vunpack.c.l.b16 %v860_v46  ;;  %v830_v56 = vrot.slane %v807_v48, 4  ;;  %v777_v57 = vadd.f32 %v776_v54, %v672_v50 }
 0x1b7   : > { %v824_v58 = vrot.slane %v806_v52, 4  ;;  %v800_v59 = vmax.f32 %v782_v53, 0.0 }
 0x1b8   : > { %v908_v60 = vsel %vm907_vm9, %v900_v51, %v899_v55  ;;  %v831_v61 = vmax.f32 %v807_v48, %v830_v56  ;;  %v799_v62 = vmax.f32 %v777_v57, 0.0 }
 0x1b9   : > { %v825_v63 = vmax.f32 %v806_v52, %v824_v58  ;;  %v809_v4 = vmul.f32 %v1951_v13, %v800_v59 }
 0x1ba   : > { %v832_v5 = vrot.slane %v831_v61, 2  ;;  %v808_v6 = vmul.f32 %v1951_v13, %v799_v62 }
 0x1bb   : > { %v826_v7 = vrot.slane %v825_v63, 2  ;;  %v842_v8 = vrot.slane %v809_v4, 4 }
 0x1bc   : > { %v833_v2 = vmax.f32 %v831_v61, %v832_v5  ;;  %v836_v9 = vrot.slane %v808_v6, 4 }
 0x1bd   : > { %v827_v10 = vmax.f32 %v825_v63, %v826_v7  ;;  %v843_v12 = vmax.f32 %v809_v4, %v842_v8  ;;  %v1387_v14 = vpop.f32.mrb[14].mxu0  ;;  %v1313_v7 = vld [vmem:[%s2014_s5] ss:$0 sm:$0xff] }
 0x1be   : > { %v834_v1 = vrot.slane %v833_v2, 1  ;;  %v837_v15 = vmax.f32 %v808_v6, %v836_v9  ;;  %v1388_v16 = vpop.f32.mrb[15].mxu0 }
 0x1bf   : > { %v828_v17 = vrot.slane %v827_v10, 1  ;;  %v844_v19 = vrot.slane %v843_v12, 2  ;;  %v1389_v20 = vadd.f32 %v1388_v16, %v1387_v14 }
 0x1c0   : > { %v835_v21 = vmax.f32 %v833_v2, %v834_v1  ;;  %v838_v18 = vrot.slane %v837_v15, 2 }
 0x1c1   : > { %v829_v22 = vmax.f32 %v827_v10, %v828_v17  ;;  %v845_v23 = vmax.f32 %v843_v12, %v844_v19  ;;  %v687_v24 = vadd.f32 %v1389_v20, %v1944_v3 }
 0x1c2   : > { %v863_v25 = vpack.c.bf16 %v835_v21, %v835_v21  ;;  %v839_v26 = vmax.f32 %v837_v15, %v838_v18  ;;  %v1627_v21 = vld [vmem:[%s2015_s6] sm:$0xff]   ;;  %v1628_v18 = vld [vmem:[%s2015_s6 + $0x8] sm:$0xff]  }
 0x1c3   : > { %v862_v27 = vpack.c.bf16 %v829_v22, %v829_v22  ;;  %v846_v0 = vrot.slane %v845_v23, 1  ;;  %v1472_v11 = vpop.f32.mrb[6].mxu1  ;;  %1494 = vmatpush3.bf16.msra.mxu1 %v1627_v21 }
 0x1c4   : > { %v840_v29 = vrot.slane %v839_v26, 1  ;;  %v792_v30 = vadd.f32 %v1472_v11, %v687_v24  ;;  %v786_v32 = vpop.f32.mrb[7].mxu1  ;;  %v902_v36 = vunpack.c.l.b16 %v863_v25  ;;  %1495 = vmatprep.subr.bf16.mxu1 %v1694_v47 }
 0x1c5   : > { %v901_v33 = vunpack.c.l.b16 %v862_v27  ;;  %v847_v34 = vmax.f32 %v845_v23, %v846_v0  ;;  %v787_v35 = vadd.f32 %v786_v32, %v682_v28  ;;  %v1323_v27 = vld [vmem:[%s2016_s7] ss:$0 sm:$0xff] }
 0x1c6   : > { %v841_v37 = vmax.f32 %v839_v26, %v840_v29  ;;  %v802_v38 = vmax.f32 %v792_v30, 0.0 }
 0x1c7   : > { %v910_v39 = vsel %vm909_vm10, %v901_v33, %v908_v60  ;;  %v865_v40 = vpack.c.bf16 %v847_v34, %v847_v34  ;;  %v801_v41 = vmax.f32 %v787_v35, 0.0  ;;  %1496 = vmatpush3.bf16.msra.mxu1 %v1628_v18 }
 0x1c8   : > { %v864_v42 = vpack.c.bf16 %v841_v37, %v841_v37  ;;  %v912_v43 = vsel %vm911_vm11, %v902_v36, %v910_v39  ;;  %v811_v44 = vmul.f32 %v1951_v13, %v802_v38  ;;  %1501 = vmatprep.subr.bf16.mxu1 %v1694_v47  ;;  %v1629_v39 = vld [vmem:[%s2017_s8] sm:$0xff]  }
 0x1c9   : > { %v810_v3 = vmul.f32 %v1951_v13, %v801_v41  ;;  %v904_v46 = vunpack.c.l.b16 %v865_v40  ;;  %v1630_v40 = vld [vmem:[%s2017_s8 + $0x8] sm:$0xff]  }
 0x1ca   : > { %v903_v31 = vunpack.c.l.b16 %v864_v42  ;;  %v854_v45 = vrot.slane %v811_v44, 4 }
 0x1cb   : > { %v848_v48 = vrot.slane %v810_v3, 4 }
 0x1cc   : > { %v914_v49 = vsel %vm913_vm12, %v903_v31, %v912_v43  ;;  %v855_v50 = vmax.f32 %v811_v44, %v854_v45  ;;  %v1328_v31 = vld [vmem:[%s2018_s9] ss:$0 sm:$0xff] }
 0x1cd   : > { %v849_v51 = vmax.f32 %v810_v3, %v848_v48  ;;  %v916_v52 = vsel %vm915_vm13, %v904_v46, %v914_v49 }
 0x1ce   : > { %v856_v53 = vrot.slane %v855_v50, 2 }
 0x1cf   : > { %v850_v54 = vrot.slane %v849_v51, 2 }
 0x1d0   : > { %v857_v55 = vmax.f32 %v855_v50, %v856_v53 }
 0x1d1   : > { %v851_v56 = vmax.f32 %v849_v51, %v850_v54 }
 0x1d2   : > { %v858_v57 = vrot.slane %v857_v55, 1 }
 0x1d3   : > { %v852_v58 = vrot.slane %v851_v56, 1 }
 0x1d4   : > { %v859_v59 = vmax.f32 %v857_v55, %v858_v57 }
 0x1d5   : > { %v853_v60 = vmax.f32 %v851_v56, %v852_v58 }
 0x1d6   : > { %v867_v61 = vpack.c.bf16 %v859_v59, %v859_v59 }
 0x1d7   : > { %v866_v62 = vpack.c.bf16 %v853_v60, %v853_v60 }
 0x1d8   : > { %v906_v63 = vunpack.c.l.b16 %v867_v61 }
 0x1d9   : > { %v905_v13 = vunpack.c.l.b16 %v866_v62 }
 0x1db   : > { %v918_v4 = vsel %vm917_vm14, %v905_v13, %v916_v52 }
 0x1dc   : > { %v920_v5 = vsel %vm919_vm15, %v906_v63, %v918_v4 }
 0x1dd   : > { %v921_v6 = vpack.c.b16 %v920_v5, %v920_v5 }
 0x1df   : > { %1490 = vmatmul.mubr.bf16.vlgmr.msra.gmra.mrb[16].mxu0 %v921_v6 }
 0x2b2   : > { %v1005_v8 = vpop.f32.mrb[16].mxu0 }
 0x2b3   : > { %v1006_v2 = vadd.f32 %v1313_v7, %v1005_v8  ;;  %v1491_v9 = vpop.f32.mrb[17].mxu0 }
 0x2b4   : > { %v1008_v10 = vpop.f32.mrb[18].mxu0 }
 0x2b5   : > { %1631 = vtanh.f32 %v1006_v2  ;;  %v1492_v12 = vpop.f32.mrb[19].mxu0  ;;  %v1322_v1 = vmul.f32 -1.442695, %v1006_v2 }
 0x2b7   : > { %1633 = vpow2.f32 %v1322_v1 }
 0x2bf   : > { %v1632_v14 = vpop.eup %1631 }
 0x2c0   : > { %1019 = vrot.lane.b32.xlu1 %v1632_v14, %s1696_s22 }
 0x2c1   : > { %v1634_v15 = vpop.eup %1633 }
 0x2c2   : > { %v1014_v16 = vadd.f32 1.0, %v1634_v15 }
 0x2c4   : > { %1635 = vrcp.f32 %v1014_v16 }
 0x2ce   : > { %v1636_v17 = vpop.eup %1635 }
 0x332   : > { %v1020_v19 = vpop.permute.xlu1 %1019 }
 0x333   : > { %v1022_v20 = vmul.f32 %v1636_v17, %v1020_v19 }
 0x335   : > { %1637 = vtanh.f32 %v1022_v20 }
 0x33f   : > { %v1638_v22 = vpop.eup %1637 }
 0x340   : > { %1025 = vrot.lane.b32.xlu0 %v1638_v22, %s1697_s27 }
 0x3b2   : > { %v1026_v23 = vpop.permute.xlu0 %1025 }
 0x3b3   : > { %v1028_v24 = vmul.f32 %v1636_v17, %v1026_v23 }
 0x3b5   : > { %v1029_v25 = vpack.c.bf16 %v1028_v24, %v1028_v24 }
 0x3b7   : > { %1042 = vrot.lane.b32.xlu1 %v1029_v25, %s1698_s28 }
 0x429   : > { %v1043_v26 = vpop.permute.xlu1 %1042 }
 0x42a   : > { %1498 = vmatmul.mubr.msk.bf16.vlgmr.msra.gmra.mrb[8].mxu1 %vm1056_vm0, %v1043_v26 }
 0x42b   : > { %1505 = vmatprep.mubr.msk.bf16.mxu1 %vm1695_vm8, %v1694_v47  ;;  %1502 = vmatpush3.bf16.msra.mxu1 %v1629_v39 }
 0x42c   : > { %1503 = vmatprep.subr.bf16.mxu1 %v1694_v47 }
 0x42f   : > { %1504 = vmatpush3.bf16.msra.mxu1 %v1630_v40 }
 0x4fd   : > { %v1094_v0 = vpop.f32.mrb[8].mxu1 }
 0x4fe   : > { %v1095_v11 = vadd.f32 %v1323_v27, %v1094_v0  ;;  %v1499_v28 = vpop.f32.mrb[9].mxu1 }
 0x4ff   : > { %v1097_v29 = vpop.f32.mrb[10].mxu1 }
 0x500   : > { %1639 = vtanh.f32 %v1095_v11  ;;  %v1500_v30 = vpop.f32.mrb[11].mxu1  ;;  %v1327_v33 = vmul.f32 -1.442695, %v1095_v11 }
 0x502   : > { %1641 = vpow2.f32 %v1327_v33 }
 0x50a   : > { %v1640_v32 = vpop.eup %1639 }
 0x50b   : > { %1108 = vrot.lane.b32.xlu0 %v1640_v32, %s1696_s22  ;;  %s374_s22 = scalar_lea.vmem %s2019_s10, %s1263_s17 }
 0x50c   : > { %v1642_v34 = vpop.eup %1641 }
 0x50d   : > { %v1103_v35 = vadd.f32 1.0, %v1642_v34 }
 0x50f   : > { %1643 = vrcp.f32 %v1103_v35 }
 0x519   : > { %v1644_v36 = vpop.eup %1643 }
 0x57d   : > { %v1109_v37 = vpop.permute.xlu0 %1108 }
 0x57e   : > { %v1111_v38 = vmul.f32 %v1644_v36, %v1109_v37 }
 0x580   : > { %1645 = vtanh.f32 %v1111_v38 }
 0x58a   : > { %v1646_v41 = vpop.eup %1645 }
 0x58b   : > { %1114 = vrot.lane.b32.xlu1 %v1646_v41, %s1697_s27 }
 0x5fd   : > { %v1115_v42 = vpop.permute.xlu1 %1114 }
 0x5fe   : > { %v1117_v43 = vmul.f32 %v1644_v36, %v1115_v42 }
 0x600   : > { %v1118_v44 = vpack.c.bf16 %v1117_v43, %v1117_v43 }
 0x602   : > { %1131 = vrot.lane.b32.xlu0 %v1118_v44, %s1698_s28 }
 0x674   : > { %v1132_v3 = vpop.permute.xlu0 %1131 }
 0x675   : > { %1506 = vmatmul.mubr.msk.bf16.vlgmr.msra.gmra.mrb[12].mxu1 %vm1056_vm0, %v1132_v3 }
 0x748   : > { %v1182_v47 = vpop.f32.mrb[12].mxu1 }
 0x749   : > { %v1183_v45 = vadd.f32 %v1328_v31, %v1182_v47  ;;  %v1507_v46 = vpop.f32.mrb[13].mxu1 }
 0x74a   : > { %v1185_v48 = vpop.f32.mrb[14].mxu1 }
 0x74b   : > { %1188 = vst [vmem:[%s374_s22] sm:$0xff] %v1183_v45  ;;  %v1508_v49 = vpop.f32.mrb[15].mxu1 }
 0x74c PF: > { %s21_s13 = sadd.s32 1, %s1685_s13  }
 0x74d   : > { %p18_p5 = scmp.ge.s32.totalorder %s21_s13, 4  }
 0x74f   :  { %20 = sbr.rel (!%p18_p5) target bundleno = 1 (0x1), region = 95 }
 0x756   :  { %1208 = vsyncpa [#allocation3], 1 }
 0x757   :  { %1210 = vsyncpa [#allocation3 + $0x1], 1 }

</bundles_post_ra>
